<compile_context>
chip_gen: v5e
topology: v5e:2x2
jax: 0.10.0
libtpu: 0.0.40
codegen_flags: <defaults>
</compile_context>

<pallas_src>
import functools

import jax
import jax.numpy as jnp
from jax.experimental import pallas as pl
from jax.experimental.pallas import tpu as pltpu


def _highway_kernel(x_ref, w_ref, b_ref, o_ref, *, weights_resident):
    """One grid step == (one batch tile, one highway layer).

    o_ref (f32) is block-resident across the inner layer axis and carries the
    activations from layer to layer.
    """
    layer = pl.program_id(1)
    S = o_ref.shape[-1]

    @pl.when(layer == 0)
    def _():
        o_ref[...] = x_ref[...].astype(o_ref.dtype)

    h = o_ref[...]                                            # [TB, S] f32 carry

    # Single fused matmul for gate / nonlinear / linear projections.
    # Resident: w_ref is the whole [L, S, 3S] stack (indexed on the leading,
    # non-tiled axis -> pure offset math).  Streaming: w_ref is already [S, 3S].
    w = w_ref[layer] if weights_resident else w_ref[...]
    pre = jnp.dot(h.astype(w.dtype), w,
                  preferred_element_type=jnp.float32)         # [TB, 3S] f32
    pre = pre + b_ref[...]                                    # [1, 3S] broadcast add

    gate = jax.nn.sigmoid(pre[:, :S])
    nonlin = jnp.maximum(pre[:, S:2 * S], 0.0)                # f = ReLU
    lin = pre[:, 2 * S:]

    # gate * nonlin + (1 - gate) * lin  ==  lin + gate * (nonlin - lin)
    o_ref[...] = lin + gate * (nonlin - lin)


def prepare_highway_params(wg, bg, wn, bn, wl, bl, *, weight_dtype=jnp.bfloat16):
    """One-time parameter prep (hoisted out of the forward path).

    wg/wn/wl: [L, S, S] in x @ W convention; bg/bn/bl: [L, S].
    Returns w_cat [L, S, 3S] (weight_dtype) and b_cat [L, 1, 3S] (f32).
    """
    w_cat = jnp.concatenate([wg, wn, wl], axis=-1).astype(weight_dtype)
    b_cat = jnp.concatenate([bg, bn, bl], axis=-1).astype(jnp.float32)[:, None, :]
    return w_cat, b_cat


def highway_forward(x, w_cat, b_cat, *, batch_tile=None, weights_resident=None,
                    vmem_limit_bytes=None):
    """x: [B, S] f32; w_cat: [L, S, 3S]; b_cat: [L, 1, 3S]."""
    B, S = x.shape
    L, S_in, S3 = w_cat.shape
    assert S_in == S and S3 == 3 * S, "weight stack must be [L, S, 3S]"
    assert S % 128 == 0, "feature size must be lane-aligned (multiple of 128)"

    # Fill the MXU M dimension; prefer >=2 batch tiles so both v7x TCs get work.
    if batch_tile is None:
        if B >= 512 and B % 256 == 0:
            batch_tile = 256
        elif B % 512 == 0:
            batch_tile = 512
        elif B % 256 == 0:
            batch_tile = 256
        elif B % 128 == 0:
            batch_tile = 128
        else:
            batch_tile = B
    TB = batch_tile
    assert B % TB == 0, "batch must be divisible by the batch tile"
    assert TB % 8 == 0, "batch tile must be a multiple of 8 (sublane rule)"

    w_itemsize = jnp.dtype(w_cat.dtype).itemsize
    w_total_bytes = L * S * 3 * S * w_itemsize
    if weights_resident is None:
        # Resident whenever comfortably affordable on all generations
        # (v7x has only 64 MiB VMEM per TensorCore).
        weights_resident = w_total_bytes <= 24 * 1024 * 1024

    x_spec = pl.BlockSpec((TB, S), lambda b, l: (b, 0))
    if weights_resident:
        # Whole weight stack resident in VMEM: constant block index -> one DMA
        # for the entire kernel invocation (no re-streaming per batch tile).
        w_spec = pl.BlockSpec((L, S, 3 * S), lambda b, l: (0, 0, 0))
    else:
        # Per-layer streamed tile; leading dim squeezed so the dot operand is 2-D.
        # TODO(synk): for very large S on v7x (64 MiB VMEM) add an N-tile grid axis.
        w_spec = pl.BlockSpec((pl.Squeezed(), S, 3 * S), lambda b, l: (l, 0, 0))
    b_spec = pl.BlockSpec((pl.Squeezed(), 1, 3 * S), lambda b, l: (l, 0, 0))
    o_spec = pl.BlockSpec((TB, S), lambda b, l: (b, 0))   # resident over layer axis

    if vmem_limit_bytes is None:
        est = (2 * TB * S * 4 * 2                       # x + out, double-buffered
               + 2 * 3 * S * 4                          # bias double buffer
               + (w_total_bytes if weights_resident
                  else 2 * S * 3 * S * w_itemsize)      # weight buffer(s)
               + TB * 3 * S * 4)                        # [TB, 3S] f32 intermediate
        vmem_limit_bytes = int(min(64 * 1024 * 1024,
                                   max(32 * 1024 * 1024, 2 * est)))

    kernel = functools.partial(_highway_kernel, weights_resident=weights_resident)

    return pl.pallas_call(
        kernel,
        out_shape=jax.ShapeDtypeStruct((B, S), jnp.float32),
        grid_spec=pltpu.PrefetchScalarGridSpec(
            num_scalar_prefetch=0,
            grid=(B // TB, L),                 # batch tiles outer, layers inner
            in_specs=[x_spec, w_spec, b_spec],
            out_specs=o_spec,
        ),
        compiler_params=pltpu.CompilerParams(
            dimension_semantics=("parallel", "arbitrary"),
            vmem_limit_bytes=vmem_limit_bytes),
    )(x, w_cat, b_cat)


def highway_reference(x, w_cat, b_cat):
    """Pure-JAX reference mirroring the kernel numerics (same weight dtype, f32 acc)."""
    L, S, _ = w_cat.shape
    h = x.astype(jnp.float32)
    for l in range(L):
        pre = jnp.dot(h.astype(w_cat.dtype), w_cat[l],
                      preferred_element_type=jnp.float32) + b_cat[l]
        gate = jax.nn.sigmoid(pre[:, :S])
        nonlin = jnp.maximum(pre[:, S:2 * S], 0.0)
        lin = pre[:, 2 * S:]
        h = lin + gate * (nonlin - lin)
    return h


if __name__ == "__main__":
    # Lane-aligned feature dim (multiple of 128); batch sized so the default
    # MXU-filling batch tile gives >= 2 batch tiles (megacore sharding on v7x).
    batch, size, num_layers = 512, 128, 3

    key = jax.random.PRNGKey(0)
    kx, kwg, kbg, kwn, kbn, kwl, kbl = jax.random.split(key, 7)

    scale = 1.0 / jnp.sqrt(size)
    x = jax.random.normal(kx, (batch, size), dtype=jnp.float32)
    wg = jax.random.uniform(kwg, (num_layers, size, size), jnp.float32, -scale, scale)
    bg = jax.random.uniform(kbg, (num_layers, size), jnp.float32, -scale, scale)
    wn = jax.random.uniform(kwn, (num_layers, size, size), jnp.float32, -scale, scale)
    bn = jax.random.uniform(kbn, (num_layers, size), jnp.float32, -scale, scale)
    wl = jax.random.uniform(kwl, (num_layers, size, size), jnp.float32, -scale, scale)
    bl = jax.random.uniform(kbl, (num_layers, size), jnp.float32, -scale, scale)

    # One-time parameter prep (concat + bf16 cast hoisted out of the forward path).
    w_cat, b_cat = prepare_highway_params(wg, bg, wn, bn, wl, bl)

    out = highway_forward(x, w_cat, b_cat, batch_tile=256)
    out = jax.block_until_ready(out)

    ref = highway_reference(x, w_cat, b_cat)
    assert out.shape == (batch, size)
    assert jnp.allclose(out, ref, atol=1e-2, rtol=1e-2), "mismatch vs reference"

    print("KERNEL_OK")
</pallas_src>

<mosaic_0001>
module attributes {stable_mosaic.version = 11 : i64} {
  func.func @_highway_kernel(%arg0: i32, %arg1: i32, %arg2: memref<256x128xf32, #tpu.memory_space<vmem>>, %arg3: memref<3x128x384xbf16, #tpu.memory_space<vmem>>, %arg4: memref<1x1x384xf32, #tpu.memory_space<vmem>>, %arg5: memref<256x128xf32, #tpu.memory_space<vmem>>) attributes {dimension_semantics = [#tpu.dimension_semantics<parallel>, #tpu.dimension_semantics<arbitrary>], iteration_bounds = array<i64: 2, 3>, scalar_prefetch = 0 : i64, scratch_operands = 0 : i64, tpu.core_type = #tpu.core_type<tc>, window_params = [{transform_indices = @transform_0, window_bounds = array<i64: 256, 128>}, {pipeline_mode = #tpu.pipeline_mode<synchronous>, transform_indices = @transform_1, window_bounds = array<i64: 3, 128, 384>}, {transform_indices = @transform_2, window_bounds = array<i64: 1, 1, 384>}, {transform_indices = @transform_3, window_bounds = array<i64: 256, 128>}]} {
    %c0_i32 = arith.constant 0 : i32
    %0 = arith.cmpi eq, %arg1, %c0_i32 : i32
    %1 = arith.extui %0 : i1 to i32
    %c0_i32_0 = arith.constant 0 : i32
    %2 = arith.cmpi ne, %1, %c0_i32_0 : i32
    scf.if %2 {
      %c0_11 = arith.constant 0 : index
      %c0_12 = arith.constant 0 : index
      %27 = vector.load %arg2[%c0_11, %c0_12] : memref<256x128xf32, #tpu.memory_space<vmem>>, vector<256x128xf32>
      %c0_13 = arith.constant 0 : index
      %c0_14 = arith.constant 0 : index
      %28 = vector.load %arg5[%c0_13, %c0_14] : memref<256x128xf32, #tpu.memory_space<vmem>>, vector<256x128xf32>
      tpu.vector_store %arg5[%c0_13, %c0_14], %27 {strides = array<i32>} : memref<256x128xf32, #tpu.memory_space<vmem>>, vector<256x128xf32>,
    } else {
    }
    %c0 = arith.constant 0 : index
    %c0_1 = arith.constant 0 : index
    %3 = vector.load %arg5[%c0, %c0_1] : memref<256x128xf32, #tpu.memory_space<vmem>>, vector<256x128xf32>
    %4 = arith.index_cast %arg1 : i32 to index
    %c0_2 = arith.constant 0 : index
    %c0_3 = arith.constant 0 : index
    %5 = vector.load %arg3[%4, %c0_2, %c0_3] : memref<3x128x384xbf16, #tpu.memory_space<vmem>>, vector<1x128x384xbf16>
    %6 = vector.shape_cast %5 : vector<1x128x384xbf16> to vector<128x384xbf16>
    %7 = arith.truncf %3 : vector<256x128xf32> to vector<256x128xbf16>
    %cst = arith.constant dense<0.000000e+00> : vector<256x384xf32>
    %8 = tpu.matmul %7, %6, %cst {dimension_numbers = #tpu.dot_dimension_numbers<[1], [0], [0], [1], [0, 0, 1, 1], [], []>} : vector<256x128xbf16>, vector<128x384xbf16>, vector<256x384xf32> -> vector<256x384xf32>
    %c0_4 = arith.constant 0 : index
    %c0_5 = arith.constant 0 : index
    %c0_6 = arith.constant 0 : index
    %9 = vector.load %arg4[%c0_4, %c0_5, %c0_6] : memref<1x1x384xf32, #tpu.memory_space<vmem>>, vector<1x1x384xf32>
    %10 = vector.shape_cast %9 : vector<1x1x384xf32> to vector<1x384xf32>
    %11 = vector.broadcast %10 : vector<1x384xf32> to vector<256x384xf32>
    %12 = arith.addf %8, %11 : vector<256x384xf32>
    %13 = vector.extract_strided_slice %12 {offsets = [0, 0], sizes = [256, 128], strides = [1, 1]} : vector<256x384xf32> to vector<256x128xf32>
    %14 = arith.negf %13 : vector<256x128xf32>
    %15 = math.exp %14 : vector<256x128xf32>
    %cst_7 = arith.constant 1.000000e+00 : f32
    %16 = vector.broadcast %cst_7 : f32 to vector<256x128xf32>
    %17 = arith.addf %16, %15 : vector<256x128xf32>
    %18 = arith.divf %16, %17 : vector<256x128xf32>
    %19 = vector.extract_strided_slice %12 {offsets = [0, 128], sizes = [256, 128], strides = [1, 1]} : vector<256x384xf32> to vector<256x128xf32>
    %cst_8 = arith.constant 0.000000e+00 : f32
    %20 = vector.broadcast %cst_8 : f32 to vector<256x128xf32>
    %21 = arith.maximumf %19, %20 : vector<256x128xf32>
    %22 = vector.extract_strided_slice %12 {offsets = [0, 256], sizes = [256, 128], strides = [1, 1]} : vector<256x384xf32> to vector<256x128xf32>
    %23 = arith.subf %21, %22 : vector<256x128xf32>
    %24 = arith.mulf %18, %23 : vector<256x128xf32>
    %25 = arith.addf %22, %24 : vector<256x128xf32>
    %c0_9 = arith.constant 0 : index
    %c0_10 = arith.constant 0 : index
    %26 = vector.load %arg5[%c0_9, %c0_10] : memref<256x128xf32, #tpu.memory_space<vmem>>, vector<256x128xf32>
    tpu.vector_store %arg5[%c0_9, %c0_10], %25 {strides = array<i32>} : memref<256x128xf32, #tpu.memory_space<vmem>>, vector<256x128xf32>,
    return
  }
  func.func @transform_0(%arg0: i32, %arg1: i32) -> (i32, i32) {
    %c0_i32 = arith.constant 0 : i32
    %c0_i32_0 = arith.constant 0 : i32
    return %arg0, %c0_i32 : i32, i32
  }
  func.func @transform_1(%arg0: i32, %arg1: i32) -> (i32, i32, i32) {
    %c0_i32 = arith.constant 0 : i32
    %c0_i32_0 = arith.constant 0 : i32
    %c0_i32_1 = arith.constant 0 : i32
    %c0_i32_2 = arith.constant 0 : i32
    return %c0_i32, %c0_i32_0, %c0_i32_1 : i32, i32, i32
  }
  func.func @transform_2(%arg0: i32, %arg1: i32) -> (i32, i32, i32) {
    %c0_i32 = arith.constant 0 : i32
    %c0_i32_0 = arith.constant 0 : i32
    %c0_i32_1 = arith.constant 0 : i32
    return %arg1, %c0_i32, %c0_i32_0 : i32, i32, i32
  }
  func.func @transform_3(%arg0: i32, %arg1: i32) -> (i32, i32) {
    %c0_i32 = arith.constant 0 : i32
    %c0_i32_0 = arith.constant 0 : i32
    return %arg0, %c0_i32 : i32, i32
  }
}

</mosaic_0001>

<bundles_post_ra>
// kernel: tpu_custom_call.1
= control target key start
LH: loop header
LB: loop body
LE: loop exit
PB: predicated region body
PF: predicated region fallthrough
CT: control target
= control target key end

     0   :  { %s3634_s0 = inlined_call_operand.hbm [shape: f32[512,128], index: 0, kind: input, shape index: {}]   ;;  %s3635_s1 = inlined_call_operand.hbm [shape: bf16[3,128,384], index: 1, kind: input, shape index: {}]   ;;  %s3636_s2 = inlined_call_operand.hbm [shape: f32[3,1,384], index: 2, kind: input, shape index: {}]   ;;  %s3637_s3 = inlined_call_operand.hbm [shape: f32[512,128], index: 3, kind: output, shape index: {}]  }
   0x1   :  { %3643 = sst [smem:[#allocation17_spill]] %s3634_s0 }
   0x2   :  { %3644 = sst [smem:[#allocation18_spill]] %s3635_s1 }
   0x3   :  { %8 = vsyncpa [#allocation3], 0 }
   0x4   :  { %10 = vsyncpa [#allocation3 + $0x1], 0 }
   0x5   :  { %11 = vsyncpa [#allocation6], 0 }
   0x6   :  { %12 = vsyncpa [#allocation4], 0 }
   0x7   :  { %14 = vsyncpa [#allocation4 + $0x1], 0  ;;  %s2414_s12 = smov 0   ;;  %s2416_s13 = smov 0  }
   0x8   :  { %s2418_s14 = smov 0   ;;  %s2420_s15 = smov 0  }
   0x9   :  { %s2422_s16 = smov 0   ;;  %s2424_s17 = smov 0  }
   0xa   :  { %s2426_s18 = smov 0   ;;  %s2428_s19 = smov 0  }
   0xb   :  { %s2430_s20 = smov 0   ;;  %s2432_s21 = smov 0  }
   0xc   :  { %s2434_s22 = smov 0  }
   0xd LB: > { %3645 = sst [smem:[#allocation13_spill]] %s2357_s15  ;;  %s1713_s23 = sadd.s32 4294967294, %s2385_s22   ;;  %s2385_s22 = sphi %s2434_s22, %s20_s22   ;;  %s2381_s21 = sphi %s2432_s21, %s3701_s21   ;;  %s2377_s20 = sphi %s2430_s20, %s3700_s20   ;;  %s2373_s19 = sphi %s2428_s19, %s3699_s19   ;;  %s2369_s18 = sphi %s2426_s18, %s3698_s18   ;;  %s2365_s17 = sphi %s2424_s17, %s3697_s17   ;;  %s2361_s16 = sphi %s2422_s16, %s3696_s16   ;;  %s2357_s15 = sphi %s2420_s15, %s3695_s15   ;;  %s2353_s14 = sphi %s2418_s14, %s3694_s14   ;;  %s2349_s13 = sphi %s2416_s13, %s3693_s13   ;;  %s2345_s12 = sphi %s2414_s12, %s3692_s12  }
   0xe   : > { %s32_s24 = sadd.s32 1, %s2381_s21  ;;  %s39_s25 = sadd.s32 1, %s2365_s17 }
   0xf   : > { %p46_p0 = scmp.ne.s32.totalorder %s2365_s17, %s2361_s16  ;;  %p47_p1 = scmp.eq.s32.totalorder %s2385_s22, 0 }
  0x10   : > { %p52_p2 = scmp.ne.s32.totalorder %s2361_s16, %s2357_s15  ;;  %p129_p3 = scmp.eq.s32.totalorder %s1713_s23, 5 }
  0x11   : > { %p2482_p4 = por %p47_p1, %p46_p0  ;;  %p1939_p5 = scmp.lt.s32.totalorder %s2385_s22, 6 }
  0x12   : > { %p2490_p6 = por %p129_p3, %p52_p2  ;;  %s163_s28 = sand.u32 1, %s2385_s22  }
  0x13   : > { %s165_s29 = sand.u32 1, %s2365_s17   ;;  %s1859_s4 = sshll.u32 %s2381_s21, 8 }
  0x14   : > { %s3647_s27 = scalar_select %p2490_p6, 1, 0 }
  0x15   : > { %s1717_s30 = sshll.u32 %s165_s29, 8  ;;  %s3649_s0 = sld [smem:[#allocation17_spill]] }
  0x16   : > { %3648 = sst [smem:[#allocation14_spill]] %s3647_s27  ;;  %s167_s9 = scalar_lea.vmem [#allocation2], %s1717_s30 }
  0x17   : > { %s175_s10 = sshll.u32 %s167_s9, 4  ;;  %p1928_p7 = pnand %p1939_p5, %p2482_p4  ;;  %s176_s10 = int_to_ptr.vmem [resolvable:$true] %s175_s10 }
  0x18   : > { %s2504_s11 = scalar_lea.sflag [#allocation3], %s163_s28  ;;  %s2387_s23 = smov 128  }
  0x19   : > { %s2388_s29 = smov 8   ;;  %s2508_s5 = sadd.s32 4294967295, %s2385_s22  }
  0x1a   : > { %p1714_p8 = scmp.ge.s32.totalorder %s2385_s22, 1  ;;  %p53_p9 = scmp.eq.s32.totalorder %s2508_s5, 0 }
  0x1b   : > { %s172_s7 = scalar_lea.hbm %s3649_s0, %s1859_s4  ;;  %p123_p10 = scmp.eq.s32.totalorder %s2508_s5, 5 }
  0x1c   : > { %s173_s8 = sshll.u32 %s172_s7, 4  ;;  %p136_p11 = scmp.lt.s32.totalorder %s2385_s22, 7  ;;  %s174_s8 = int_to_ptr.hbm [resolvable:$true] %s173_s8 }
  0x1d   : > { %1930 = dma.hbm_to_vmem [thread:$0]  (!%p1928_p7), %s174_s8, 4096, %s176_s10, %s2504_s11, %s2387_s23, %s2387_s23, %s2388_s29  }
  0x1e   : > { %p2519_p12 = por %p53_p9, %p52_p2  ;;  %p2526_p13 = por %p123_p10, %p46_p0 }
  0x1f   : > { %p2530_p3 = pnand %p1714_p8, %p136_p11  ;;  %s3654_s1 = sld [smem:[#allocation18_spill]] }
  0x20   : > { %s3651_s28 = scalar_select %p2526_p13, 1, 0 }
  0x21   : > { %p1923_p0 = pneg %p2530_p3  ;;  %s2389_s8 = smov [#allocation5]  }
  0x22   : > { %3652 = sst [smem:[#allocation15_spill]] %s3651_s28  ;;  %s149_s9 = sshll.u32 %s2389_s8, 4  ;;  %s150_s9 = int_to_ptr.vmem [resolvable:$true] %s149_s9 }
  0x23   : > { %p1924_p2 = pnand %p1923_p0, %p53_p9  ;;  %s2390_s10 = smov 192  }
  0x24   : > { %s2391_s23 = smov 12   ;;  %s29_s29 = sadd.s32 1, %s2377_s20 }
  0x25   : > { %s147_s7 = sshll.u32 %s3654_s1, 4  ;;  %p30_p4 = scmp.ge.s32.totalorder %s29_s29, 3  ;;  %s148_s7 = int_to_ptr.hbm [resolvable:$true] %s147_s7 }
  0x26   : > { %1926 = dma.hbm_to_vmem [thread:$0]  (!%p1924_p2), %s148_s7, 9216, %s150_s9, [#allocation6], %s2390_s10, %s2390_s10, %s2391_s23  }
  0x27   : > { %s86_s4 = sadd.s32 1, %s2353_s14  ;;  %p93_p7 = scmp.ne.s32.totalorder %s2353_s14, %s2349_s13 }
  0x28   : > { %p99_p8 = scmp.ne.s32.totalorder %s2349_s13, %s2345_s12  ;;  %s3703_s29 = smov (%p30_p4, %s29_s29), 0 }
  0x29   : > { %3655 = sst [smem:[#allocation16_spill]] %s3703_s29  ;;  %s3705_s24 = smov (!%p30_p4, %s32_s24), %s2381_s21 }
  0x2a   : > { %s83_s6 = ssub.s32 %s2377_s20, %s3703_s29  ;;  %p95_p10 = por %p93_p7, %p47_p1 }
  0x2b   : > { %p34_p11 = scmp.ge.s32.totalorder %s3705_s24, 2  ;;  %p84_p0 = scmp.eq.s32.totalorder %s83_s6, 0 }
  0x2c   : > { %p2558_p2 = por %p99_p8, %p53_p9  ;;  %s187_s8 = sand.u32 1, %s2353_s14  }
  0x2d   : > { %s3707_s24 = smov (%p34_p11, %s3705_s24), 0  ;;  %s1910_s10 = smul.u32 3, %s187_s8 }
  0x2e   : > { %s2566_s12 = scalar_select %p84_p0, %s2353_s14, %s86_s4  }
  0x2f   : > { %s36_s9 = ssub.s32 %s2381_s21, %s3707_s24  ;;  %s1911_s23 = smul.u32 3, %s2377_s20 }
  0x30   : > { %p37_p4 = scmp.eq.s32.totalorder %s36_s9, 0  ;;  %p1931_p1 = pnand %p1939_p5, %p95_p10 }
  0x31   : > { %s193_s29 = scalar_lea.hbm %s3636_s2, %s1911_s23  ;;  %s189_s27 = scalar_lea.vmem [#allocation7], %s1910_s10 }
  0x32   : > { %s2576_s6 = scalar_select %p37_p4, %s2365_s17, %s39_s25  }
  0x33   : > { %s197_s15 = sshll.u32 %s189_s27, 4  ;;  %s195_s28 = sshll.u32 %s193_s29, 4  ;;  %s198_s15 = int_to_ptr.vmem [resolvable:$true] %s197_s15  ;;  %s196_s28 = int_to_ptr.hbm [resolvable:$true] %s195_s28 }
  0x34   : > { %1933 = dma.hbm_to_vmem [thread:$0]  (!%p1931_p1), %s196_s28, 48, %s198_s15, %s2504_s11  }
  0x35   : > { %206 = sbr.rel (%p2530_p3) target bundleno = 491 (0x1eb), region = 32  ;;  %s208_s4 = sand.u32 (!%p2530_p3), 1, %s2508_s5  }
  0x36   : > { %s210_s25 = sand.u32 (!%p2530_p3), 1, %s2361_s16   ;;  %s209_s9 = scalar_lea.sflag (!%p2530_p3), [#allocation3], %s208_s4 }
  0x37   : > { %s1721_s8 = sshll.u32 (!%p2530_p3), %s210_s25, 8 }
  0x38   : > { %s2588_s0 = scalar_lea.vmem (!%p2530_p3), [#allocation2], %s1721_s8 }
  0x3a   : > { %2328 = dma.done.wait (%p2519_p12), %s209_s9, 4096  }
  0x3b   : > { %2330 = vsyncadd (%p2519_p12), %s209_s9, 4294963200 }
  0x3c   : > { %2332 = dma.done.wait (%p53_p9), [#allocation6], 9216  }
  0x3d   : > { %2334 = vsyncadd (%p53_p9), [#allocation6], 4294958080  ;;  %s225_s1 = sand.u32 1, %s2349_s13  }
  0x3e   : > { %s2599_s15 = smul.u32 3, %s225_s1 }
  0x40   : > { %s227_s27 = scalar_lea.vmem [#allocation7], %s2599_s15 }
  0x41   : > { %2336 = dma.done.wait (%p2558_p2), %s209_s9, 48  }
  0x42   : > { %2338 = vsyncadd (%p2558_p2), %s209_s9, 4294967248  ;;  %s2606_s11 = scalar_lea.vmem [#allocation8], %s1721_s8  ;;  %p1724_p5 = scmp.ne.s32.totalorder %s2369_s18, 0 }
  0x44   : > { %261 = sbr.rel (%p1724_p5) target bundleno = 106 (0x6a), region = 48 }
  0x49   : > { %v262_v0 = vld [vmem:[%s2588_s0] sm:$0xff]  ;;  %v263_v1 = vld [vmem:[%s2588_s0 + $0x8] sm:$0xff]  ;;  %v264_v2 = vld [vmem:[%s2588_s0 + $0x10] sm:$0xff] }
  0x4a   : > { %294 = vst [vmem:[%s2606_s11] sm:$0xff] %v262_v0  ;;  %v265_v3 = vld [vmem:[%s2588_s0 + $0x18] sm:$0xff]  ;;  %v266_v4 = vld [vmem:[%s2588_s0 + $0x20] sm:$0xff]  ;;  %v267_v5 = vld [vmem:[%s2588_s0 + $0x28] sm:$0xff] }
  0x4b   : > { %295 = vst [vmem:[%s2606_s11 + $0x8] sm:$0xff] %v263_v1  ;;  %v268_v6 = vld [vmem:[%s2588_s0 + $0x30] sm:$0xff]  ;;  %v269_v7 = vld [vmem:[%s2588_s0 + $0x38] sm:$0xff]  ;;  %v270_v8 = vld [vmem:[%s2588_s0 + $0x40] sm:$0xff] }
  0x4c   : > { %296 = vst [vmem:[%s2606_s11 + $0x10] sm:$0xff] %v264_v2  ;;  %v271_v9 = vld [vmem:[%s2588_s0 + $0x48] sm:$0xff]  ;;  %v272_v10 = vld [vmem:[%s2588_s0 + $0x50] sm:$0xff]  ;;  %v273_v11 = vld [vmem:[%s2588_s0 + $0x58] sm:$0xff] }
  0x4d   : > { %297 = vst [vmem:[%s2606_s11 + $0x18] sm:$0xff] %v265_v3  ;;  %v274_v12 = vld [vmem:[%s2588_s0 + $0x60] sm:$0xff]  ;;  %v275_v13 = vld [vmem:[%s2588_s0 + $0x68] sm:$0xff]  ;;  %v276_v14 = vld [vmem:[%s2588_s0 + $0x70] sm:$0xff] }
  0x4e   : > { %298 = vst [vmem:[%s2606_s11 + $0x20] sm:$0xff] %v266_v4  ;;  %v277_v15 = vld [vmem:[%s2588_s0 + $0x78] sm:$0xff]  ;;  %v278_v16 = vld [vmem:[%s2588_s0 + $0x80] sm:$0xff]  ;;  %v279_v17 = vld [vmem:[%s2588_s0 + $0x88] sm:$0xff] }
  0x4f   : > { %299 = vst [vmem:[%s2606_s11 + $0x28] sm:$0xff] %v267_v5  ;;  %v280_v18 = vld [vmem:[%s2588_s0 + $0x90] sm:$0xff]  ;;  %v281_v19 = vld [vmem:[%s2588_s0 + $0x98] sm:$0xff]  ;;  %v282_v20 = vld [vmem:[%s2588_s0 + $0xa0] sm:$0xff] }
  0x50   : > { %300 = vst [vmem:[%s2606_s11 + $0x30] sm:$0xff] %v268_v6  ;;  %v283_v21 = vld [vmem:[%s2588_s0 + $0xa8] sm:$0xff]  ;;  %v284_v22 = vld [vmem:[%s2588_s0 + $0xb0] sm:$0xff]  ;;  %v285_v23 = vld [vmem:[%s2588_s0 + $0xb8] sm:$0xff] }
  0x51   : > { %301 = vst [vmem:[%s2606_s11 + $0x38] sm:$0xff] %v269_v7  ;;  %v286_v24 = vld [vmem:[%s2588_s0 + $0xc0] sm:$0xff]  ;;  %v287_v25 = vld [vmem:[%s2588_s0 + $0xc8] sm:$0xff]  ;;  %v288_v26 = vld [vmem:[%s2588_s0 + $0xd0] sm:$0xff] }
  0x52   : > { %302 = vst [vmem:[%s2606_s11 + $0x40] sm:$0xff] %v270_v8  ;;  %v289_v27 = vld [vmem:[%s2588_s0 + $0xd8] sm:$0xff]  ;;  %v290_v28 = vld [vmem:[%s2588_s0 + $0xe0] sm:$0xff]  ;;  %v291_v29 = vld [vmem:[%s2588_s0 + $0xe8] sm:$0xff] }
  0x53   : > { %303 = vst [vmem:[%s2606_s11 + $0x48] sm:$0xff] %v271_v9  ;;  %v292_v30 = vld [vmem:[%s2588_s0 + $0xf0] sm:$0xff]  ;;  %v293_v31 = vld [vmem:[%s2588_s0 + $0xf8] sm:$0xff] }
  0x54   : > { %304 = vst [vmem:[%s2606_s11 + $0x50] sm:$0xff] %v272_v10 }
  0x55   : > { %305 = vst [vmem:[%s2606_s11 + $0x58] sm:$0xff] %v273_v11 }
  0x56   : > { %306 = vst [vmem:[%s2606_s11 + $0x60] sm:$0xff] %v274_v12 }
  0x57   : > { %307 = vst [vmem:[%s2606_s11 + $0x68] sm:$0xff] %v275_v13 }
  0x58   : > { %308 = vst [vmem:[%s2606_s11 + $0x70] sm:$0xff] %v276_v14 }
  0x59   : > { %309 = vst [vmem:[%s2606_s11 + $0x78] sm:$0xff] %v277_v15 }
  0x5a   : > { %310 = vst [vmem:[%s2606_s11 + $0x80] sm:$0xff] %v278_v16 }
  0x5b   : > { %311 = vst [vmem:[%s2606_s11 + $0x88] sm:$0xff] %v279_v17 }
  0x5c   : > { %312 = vst [vmem:[%s2606_s11 + $0x90] sm:$0xff] %v280_v18 }
  0x5d   : > { %313 = vst [vmem:[%s2606_s11 + $0x98] sm:$0xff] %v281_v19 }
  0x5e   : > { %314 = vst [vmem:[%s2606_s11 + $0xa0] sm:$0xff] %v282_v20 }
  0x5f   : > { %315 = vst [vmem:[%s2606_s11 + $0xa8] sm:$0xff] %v283_v21 }
  0x60   : > { %316 = vst [vmem:[%s2606_s11 + $0xb0] sm:$0xff] %v284_v22 }
  0x61   : > { %317 = vst [vmem:[%s2606_s11 + $0xb8] sm:$0xff] %v285_v23 }
  0x62   : > { %318 = vst [vmem:[%s2606_s11 + $0xc0] sm:$0xff] %v286_v24 }
  0x63   : > { %319 = vst [vmem:[%s2606_s11 + $0xc8] sm:$0xff] %v287_v25 }
  0x64   : > { %320 = vst [vmem:[%s2606_s11 + $0xd0] sm:$0xff] %v288_v26 }
  0x65   : > { %321 = vst [vmem:[%s2606_s11 + $0xd8] sm:$0xff] %v289_v27 }
  0x66   : > { %322 = vst [vmem:[%s2606_s11 + $0xe0] sm:$0xff] %v290_v28 }
  0x67   : > { %323 = vst [vmem:[%s2606_s11 + $0xe8] sm:$0xff] %v291_v29 }
  0x68   : > { %324 = vst [vmem:[%s2606_s11 + $0xf0] sm:$0xff] %v292_v30 }
  0x69   : > { %325 = vst [vmem:[%s2606_s11 + $0xf8] sm:$0xff] %v293_v31 }
  0x6a PF: > { %s1860_s5 = smul.u32 192, %s2369_s18  ;;  %v326_v31 = vld [vmem:[%s2606_s11] sm:$0xff]  ;;  %s1885_s18 = sshll.u32 %s2373_s19, 8 }
  0x6b   : > { %s1592_s29 = scalar_lea.hbm %s3637_s3, %s1885_s18  ;;  %s1593_s7 = sshll.u32 %s2606_s11, 4  ;;  %s1594_s7 = int_to_ptr.vmem [resolvable:$true] %s1593_s7 }
  0x6c   : > { %s2674_s26 = scalar_lea.vmem [#allocation5], %s1860_s5  ;;  %s1595_s10 = sshll.u32 %s1592_s29, 4  ;;  %s1596_s10 = int_to_ptr.hbm [resolvable:$true] %s1595_s10 }
  0x6d   : > { %v1812_v32 = vld [vmem:[%s2674_s26 + $0xa8] sm:$0xf]  ;;  %v1883_v33 = vld [vmem:[%s2674_s26 + $0xb0] sm:$0xf0]  ;;  %v1800_v34 = vld [vmem:[%s2674_s26 + $0x90] sm:$0xf] }
  0x6e   : > { %v1813_v35 = vor.u32 %v1883_v33, %v1812_v32  ;;  %v1880_v36 = vld [vmem:[%s2674_s26 + $0x98] sm:$0xf0]  ;;  %v1820_v37 = vld [vmem:[%s2674_s26 + $0xb0] sm:$0xf]  ;;  %v1788_v39 = vld [vmem:[%s2674_s26 + $0x78] sm:$0xf] }
  0x6f   : > { %v1801_v38 = vor.u32 %v1880_v36, %v1800_v34  ;;  %v1877_v40 = vld [vmem:[%s2674_s26 + $0x80] sm:$0xf0]  ;;  %v1884_v41 = vld [vmem:[%s2674_s26 + $0xb8] sm:$0xf0]  ;;  %v1882_v43 = vld [vmem:[%s2674_s26 + $0xac] sm:$0xf] }
  0x70   : > { %545 = vmatpush.bf16.msra.mxu0 %v1813_v35  ;;  %1886 = vmatpush.bf16.msra.mxu3 %v1813_v35  ;;  %v2684_v42 = vor.u32 %v1884_v41, %v1820_v37  ;;  %v1814_v44 = vld [vmem:[%s2674_s26 + $0xb4] sm:$0xf0]  ;;  %v1881_v47 = vld [vmem:[%s2674_s26 + $0xa0] sm:$0xf0]  ;;  %v1879_v49 = vld [vmem:[%s2674_s26 + $0x94] sm:$0xf]  ;;  %v1789_v51 = vor.u32 %v1877_v40, %v1788_v39 }
  0x71   : > { %v1808_v45 = vld [vmem:[%s2674_s26 + $0x98] sm:$0xf]  ;;  %v2689_v46 = vor.u32 %v1882_v43, %v1814_v44  ;;  %v1802_v50 = vld [vmem:[%s2674_s26 + $0x9c] sm:$0xf0]  ;;  %v1878_v53 = vld [vmem:[%s2674_s26 + $0x88] sm:$0xf0] }
  0x72   : > { %723 = vmatpush.bf16.msra.mxu2 %v2684_v42  ;;  %v2693_v48 = vor.u32 %v1881_v47, %v1808_v45  ;;  %v1796_v52 = vld [vmem:[%s2674_s26 + $0x80] sm:$0xf]  ;;  %v1874_v55 = vld [vmem:[%s2674_s26 + $0x68] sm:$0xf0]  ;;  %v2702_v56 = vor.u32 %v1879_v49, %v1802_v50  ;;  %v1876_v57 = vld [vmem:[%s2674_s26 + $0x7c] sm:$0xf] }
  0x73   : > { %v1776_v54 = vld [vmem:[%s2674_s26 + $0x60] sm:$0xf]  ;;  %634 = vmatpush.bf16.msra.mxu1 %v2689_v46  ;;  %v1790_v58 = vld [vmem:[%s2674_s26 + $0x84] sm:$0xf0]  ;;  %v2707_v59 = vor.u32 %v1878_v53, %v1796_v52  ;;  %v1875_v62 = vld [vmem:[%s2674_s26 + $0x70] sm:$0xf0] }
  0x74   : > { %546 = vmatpush.bf16.msra.mxu0 %v1801_v38  ;;  %1887 = vmatpush.bf16.msra.mxu3 %v1801_v38  ;;  %v1777_v60 = vor.u32 %v1874_v55, %v1776_v54  ;;  %v1784_v61 = vld [vmem:[%s2674_s26 + $0x68] sm:$0xf]  ;;  %v1871_v0 = vld [vmem:[%s2674_s26 + $0x50] sm:$0xf0]  ;;  %v2714_v1 = vor.u32 %v1876_v57, %v1790_v58  ;;  %v1873_v2 = vld [vmem:[%s2674_s26 + $0x64] sm:$0xf] }
  0x75   : > { %v1764_v63 = vld [vmem:[%s2674_s26 + $0x48] sm:$0xf]  ;;  %v1778_v3 = vld [vmem:[%s2674_s26 + $0x6c] sm:$0xf0]  ;;  %v2719_v4 = vor.u32 %v1875_v62, %v1784_v61  ;;  %v1872_v7 = vld [vmem:[%s2674_s26 + $0x58] sm:$0xf0] }
  0x76   : > { %724 = vmatpush.bf16.msra.mxu2 %v2693_v48  ;;  %v1765_v5 = vor.u32 %v1871_v0, %v1764_v63  ;;  %v1772_v6 = vld [vmem:[%s2674_s26 + $0x50] sm:$0xf]  ;;  %v1868_v9 = vld [vmem:[%s2674_s26 + $0x38] sm:$0xf0]  ;;  %v2726_v10 = vor.u32 %v1873_v2, %v1778_v3  ;;  %v1870_v11 = vld [vmem:[%s2674_s26 + $0x4c] sm:$0xf] }
  0x77   : > { %635 = vmatpush.bf16.msra.mxu1 %v2702_v56  ;;  %v1752_v8 = vld [vmem:[%s2674_s26 + $0x30] sm:$0xf]  ;;  %v1766_v12 = vld [vmem:[%s2674_s26 + $0x54] sm:$0xf0]  ;;  %v2731_v13 = vor.u32 %v1872_v7, %v1772_v6  ;;  %v1869_v16 = vld [vmem:[%s2674_s26 + $0x40] sm:$0xf0] }
  0x78   : > { %547 = vmatpush.bf16.msra.mxu0 %v1789_v51  ;;  %1888 = vmatpush.bf16.msra.mxu3 %v1789_v51  ;;  %v1753_v14 = vor.u32 %v1868_v9, %v1752_v8  ;;  %v1760_v15 = vld [vmem:[%s2674_s26 + $0x38] sm:$0xf]  ;;  %v1865_v18 = vld [vmem:[%s2674_s26 + $0x20] sm:$0xf0]  ;;  %v1769_v19 = vor.u32 %v1870_v11, %v1766_v12  ;;  %v1867_v20 = vld [vmem:[%s2674_s26 + $0x34] sm:$0xf] }
  0x79   : > { %v1740_v17 = vld [vmem:[%s2674_s26 + $0x18] sm:$0xf]  ;;  %v1754_v21 = vld [vmem:[%s2674_s26 + $0x3c] sm:$0xf0]  ;;  %v2741_v22 = vor.u32 %v1869_v16, %v1760_v15  ;;  %v1866_v25 = vld [vmem:[%s2674_s26 + $0x28] sm:$0xf0] }
  0x7a   : > { %725 = vmatpush.bf16.msra.mxu2 %v2707_v59  ;;  %v1741_v23 = vor.u32 %v1865_v18, %v1740_v17  ;;  %v1748_v24 = vld [vmem:[%s2674_s26 + $0x20] sm:$0xf]  ;;  %v1862_v27 = vld [vmem:[%s2674_s26 + $0x8] sm:$0xf0]  ;;  %v1757_v28 = vor.u32 %v1867_v20, %v1754_v21  ;;  %v1864_v29 = vld [vmem:[%s2674_s26 + $0x1c] sm:$0xf] }
  0x7b   : > { %636 = vmatpush.bf16.msra.mxu1 %v2714_v1  ;;  %v1728_v26 = vld [vmem:[%s2674_s26] sm:$0xf]  ;;  %v1742_v30 = vld [vmem:[%s2674_s26 + $0x24] sm:$0xf0]  ;;  %v2751_v32 = vor.u32 %v1866_v25, %v1748_v24  ;;  %v327_v34 = vld [vmem:[%s2606_s11 + $0x8] sm:$0xff]  ;;  %s1581_s23 = scalar_lea.sflag [#allocation4], %s210_s25 }
  0x7c   : > { %548 = vmatpush.bf16.msra.mxu0 %v1777_v60  ;;  %1889 = vmatpush.bf16.msra.mxu3 %v1777_v60  ;;  %v1729_v33 = vor.u32 %v1862_v27, %v1728_v26  ;;  %v350_v35 = vld [vmem:[%s2606_s11 + $0xc0] sm:$0xff]  ;;  %v351_v36 = vld [vmem:[%s2606_s11 + $0xc8] sm:$0xff]  ;;  %v1745_v37 = vor.u32 %v1864_v29, %v1742_v30  ;;  %v393_v43 = vpack.c.bf16 %v327_v34, %v326_v31  ;;  %v328_v49 = vld [vmem:[%s2606_s11 + $0x10] sm:$0xff]  ;;  %s2269_s4 = sshra.s32 %s1596_s10, 4  ;;  %s2275_s1 = scalar_lea.hbm %s3637_s3, 512  ;;  %s2270_s4 = int_to_ptr.hbm [resolvable:$true] %s2269_s4 }
  0x7d   : > { %v1736_v38 = vld [vmem:[%s2674_s26 + $0x8] sm:$0xf]  ;;  %v1863_v39 = vld [vmem:[%s2674_s26 + $0x10] sm:$0xf0]  ;;  %v1861_v40 = vld [vmem:[%s2674_s26 + $0x4] sm:$0xf]  ;;  %v2760_v44 = vpack.c.bf16 %v351_v36, %v350_v35  ;;  %p2276_p7 = scmp.lt.s32.totalorder %s2270_s4, %s3637_s3 }
  0x7e   : > { %726 = vmatpush.bf16.msra.mxu2 %v2719_v4  ;;  %v1730_v41 = vld [vmem:[%s2674_s26 + $0xc] sm:$0xf0]  ;;  %v1737_v45 = vor.u32 %v1863_v39, %v1736_v38  ;;  %v329_v50 = vld [vmem:[%s2606_s11 + $0x18] sm:$0xff]  ;;  %v352_v51 = vld [vmem:[%s2606_s11 + $0xd0] sm:$0xff]  ;;  %s2271_s8 = scalar_lea.hbm %s2270_s4, 256 }
  0x7f   : > { %637 = vmatpush.bf16.msra.mxu1 %v2726_v10  ;;  %v1733_v47 = vor.u32 %v1861_v40, %v1730_v41  ;;  %v353_v52 = vld [vmem:[%s2606_s11 + $0xd8] sm:$0xff]  ;;  %v330_v54 = vld [vmem:[%s2606_s11 + $0x20] sm:$0xff]  ;;  %v331_v55 = vld [vmem:[%s2606_s11 + $0x28] sm:$0xff]  ;;  %p2272_p9 = scmp.ne.s32.totalorder %s2270_s4, %s2271_s8  ;;  %p2277_p8 = scmp.lt.s32.totalorder %s2275_s1, %s2271_s8 }
  0x80   : > { %549 = vmatpush.bf16.msra.mxu0 %v1765_v5  ;;  %1890 = vmatpush.bf16.msra.mxu3 %v1765_v5  ;;  %v2772_v53 = vpack.c.bf16 %v353_v52, %v352_v51  ;;  %v355_v57 = vld [vmem:[%s2606_s11 + $0xe8] sm:$0xff]  ;;  %v395_v58 = vpack.c.bf16 %v331_v55, %v330_v54  ;;  %v332_v61 = vld [vmem:[%s2606_s11 + $0x30] sm:$0xff]  ;;  %v333_v62 = vld [vmem:[%s2606_s11 + $0x38] sm:$0xff] }
  0x81   : > { %v356_v63 = vld [vmem:[%s2606_s11 + $0xf0] sm:$0xff]  ;;  %v396_v0 = vpack.c.bf16 %v333_v62, %v332_v61  ;;  %v338_v6 = vld [vmem:[%s2606_s11 + $0x60] sm:$0xff]  ;;  %v339_v7 = vld [vmem:[%s2606_s11 + $0x68] sm:$0xff]  ;;  %p2273_p12 = pnand %p2272_p9, %p2526_p13  ;;  %p2278_p10 = por %p2277_p8, %p2276_p7 }
  0x82   : > { %727 = vmatpush.bf16.msra.mxu2 %v2731_v13  ;;  %v336_v3 = vld [vmem:[%s2606_s11 + $0x50] sm:$0xff]  ;;  %v399_v8 = vpack.c.bf16 %v339_v7, %v338_v6  ;;  %v409_v12 = vld [vmem:[%s227_s27] sm:$0x7] }
  0x83   : > { %638 = vmatpush.bf16.msra.mxu1 %v1769_v19  ;;  %v340_v9 = vld [vmem:[%s2606_s11 + $0x70] sm:$0xff]  ;;  %v2812_v15 = vperm.slane %v409_v12, 0  ;;  %v345_v29 = vld [vmem:[%s2606_s11 + $0x98] sm:$0xff]  ;;  %v2824_v38 = vperm.slane %v409_v12, 2  ;;  %p2274_p3 = pneg %p2273_p12 }
  0x84   : > { %550 = vmatpush.bf16.msra.mxu0 %v1753_v14  ;;  %1891 = vmatpush.bf16.msra.mxu3 %v1753_v14  ;;  %v343_v14 = vld [vmem:[%s2606_s11 + $0x88] sm:$0xff] }
  0x85   : > { %p2279_p11 = pnand %p2278_p10, %p2274_p3 }
  0x86   : > { %728 = vmatpush.bf16.msra.mxu2 %v2741_v22 }
  0x87   : > { %639 = vmatpush.bf16.msra.mxu1 %v1757_v28 }
  0x88   : > { %551 = vmatpush.bf16.msra.mxu0 %v1741_v23  ;;  %1892 = vmatpush.bf16.msra.mxu3 %v1741_v23 }
  0x8a   : > { %729 = vmatpush.bf16.msra.mxu2 %v2751_v32 }
  0x8b   : > { %640 = vmatpush.bf16.msra.mxu1 %v1745_v37 }
  0x8c   : > { %552 = vmatpush.bf16.msra.mxu0 %v1729_v33  ;;  %1893 = vmatpush.bf16.msra.mxu3 %v1729_v33 }
  0x8e   : > { %730 = vmatpush.bf16.msra.mxu2 %v1737_v45 }
  0x8f   : > { %553 = vmatmul.bf16.vlgmr.msra.gmra.mxu0 %v393_v43  ;;  %613 = vmatmul.bf16.vlgmr.msra.gmra.mxu3 %v2760_v44 }
  0x90   : > { %1894 = vmatpush.bf16.msrb.mxu3 %v2689_v46  ;;  %641 = vmatpush.bf16.msra.mxu1 %v1733_v47  ;;  %v394_v46 = vpack.c.bf16 %v329_v50, %v328_v49 }
  0x91   : > { %731 = vmatmul.bf16.vlgmr.msra.gmra.mxu2 %v393_v43 }
  0x93   : > { %642 = vmatmul.bf16.vlgmr.msra.gmra.mxu1 %v393_v43 }
  0x94   : > { %1895 = vmatpush.bf16.msrb.mxu3 %v2702_v56  ;;  %v354_v56 = vld [vmem:[%s2606_s11 + $0xe0] sm:$0xff] }
  0x95   : > { %v2780_v60 = vpack.c.bf16 %v355_v57, %v354_v56 }
  0x98   : > { %1896 = vmatpush.bf16.msrb.mxu3 %v2714_v1  ;;  %v335_v1 = vld [vmem:[%s2606_s11 + $0x48] sm:$0xff] }
  0x9c   : > { %1897 = vmatpush.bf16.msrb.mxu3 %v2726_v10  ;;  %v341_v10 = vld [vmem:[%s2606_s11 + $0x78] sm:$0xff] }
  0x9d   : > { %v400_v11 = vpack.c.bf16 %v341_v10, %v340_v9 }
  0x9f   : > { %558 = vmatmul.bf16.gmra.mxu0 %v394_v46  ;;  %618 = vmatmul.bf16.gmra.mxu3 %v2772_v53 }
  0xa0   : > { %1898 = vmatpush.bf16.msrb.mxu3 %v1769_v19 }
  0xa1   : > { %736 = vmatmul.bf16.gmra.mxu2 %v394_v46 }
  0xa3   : > { %647 = vmatmul.bf16.gmra.mxu1 %v394_v46 }
  0xa4   : > { %1899 = vmatpush.bf16.msrb.mxu3 %v1757_v28  ;;  %v344_v28 = vld [vmem:[%s2606_s11 + $0x90] sm:$0xff] }
  0xa5   : > { %v402_v34 = vpack.c.bf16 %v345_v29, %v344_v28 }
  0xa8   : > { %1900 = vmatpush.bf16.msrb.mxu3 %v1745_v37 }
  0xac   : > { %1901 = vmatpush.bf16.msrb.mxu3 %v1733_v47 }
  0xaf   : > { %563 = vmatmul.bf16.gmra.mxu0 %v395_v58  ;;  %623 = vmatmul.bf16.gmra.mxu3 %v2780_v60 }
  0xb0   : > { %1902 = vmatpush.bf16.msra.mxu3 %v2684_v42  ;;  %v357_v42 = vld [vmem:[%s2606_s11 + $0xf8] sm:$0xff] }
  0xb1   : > { %741 = vmatmul.bf16.gmra.mxu2 %v395_v58 }
  0xb3   : > { %652 = vmatmul.bf16.gmra.mxu1 %v395_v58 }
  0xb4   : > { %1903 = vmatpush.bf16.msra.mxu3 %v2693_v48  ;;  %v2791_v48 = vpack.c.bf16 %v357_v42, %v356_v63 }
  0xb8   : > { %1904 = vmatpush.bf16.msra.mxu3 %v2707_v59  ;;  %v334_v59 = vld [vmem:[%s2606_s11 + $0x40] sm:$0xff] }
  0xb9   : > { %v397_v2 = vpack.c.bf16 %v335_v1, %v334_v59 }
  0xbc   : > { %1905 = vmatpush.bf16.msra.mxu3 %v2719_v4  ;;  %v337_v4 = vld [vmem:[%s2606_s11 + $0x58] sm:$0xff] }
  0xbd   : > { %v398_v5 = vpack.c.bf16 %v337_v4, %v336_v3  ;;  %v346_v4 = vld [vmem:[%s2606_s11 + $0xa0] sm:$0xff] }
  0xbf   : > { %568 = vmatmul.bf16.gmra.mxu0 %v396_v0  ;;  %628 = vmatmul.bf16.gmra.mxu3 %v2791_v48 }
  0xc0   : > { %1906 = vmatpush.bf16.msra.mxu3 %v2731_v13  ;;  %v342_v13 = vld [vmem:[%s2606_s11 + $0x80] sm:$0xff] }
  0xc1   : > { %746 = vmatmul.bf16.gmra.mxu2 %v396_v0  ;;  %v401_v16 = vpack.c.bf16 %v343_v14, %v342_v13 }
  0xc3   : > { %657 = vmatmul.bf16.gmra.mxu1 %v396_v0 }
  0xc4   : > { %1907 = vmatpush.bf16.msra.mxu3 %v2741_v22 }
  0xc8   : > { %1908 = vmatpush.bf16.msra.mxu3 %v2751_v32  ;;  %v2819_v32 = vperm.slane %v409_v12, 1 }
  0xcc   : > { %1909 = vmatpush.bf16.msra.mxu3 %v1737_v45 }
  0xcf   : > { %573 = vmatmul.bf16.gmra.mxu0 %v397_v2  ;;  %702 = vmatmul.bf16.vlgmr.msrb.gmra.mxu3 %v2760_v44 }
  0xd1   : > { %751 = vmatmul.bf16.gmra.mxu2 %v397_v2 }
  0xd3   : > { %662 = vmatmul.bf16.gmra.mxu1 %v397_v2 }
  0xdf   : > { %578 = vmatmul.bf16.gmra.mxu0 %v398_v5  ;;  %707 = vmatmul.bf16.gmra.mxu3 %v2772_v53 }
  0xe1   : > { %756 = vmatmul.bf16.gmra.mxu2 %v398_v5 }
  0xe3   : > { %667 = vmatmul.bf16.gmra.mxu1 %v398_v5  ;;  %v347_v5 = vld [vmem:[%s2606_s11 + $0xa8] sm:$0xff] }
  0xef   : > { %583 = vmatmul.bf16.gmra.mxu0 %v399_v8  ;;  %712 = vmatmul.bf16.gmra.mxu3 %v2780_v60 }
  0xf1   : > { %761 = vmatmul.bf16.gmra.mxu2 %v399_v8 }
  0xf3   : > { %672 = vmatmul.bf16.gmra.mxu1 %v399_v8 }
  0xff   : > { %588 = vmatmul.bf16.gmra.mxu0 %v400_v11  ;;  %717 = vmatmul.bf16.gmra.mxu3 %v2791_v48 }
 0x101   : > { %766 = vmatmul.bf16.gmra.mxu2 %v400_v11 }
 0x103   : > { %677 = vmatmul.bf16.gmra.mxu1 %v400_v11 }
 0x10c   : > { %v554_v17 = vpop.f32.mrf.mxu0 }
 0x10d   : > { %v555_v18 = vadd.f32 %v554_v17, %v2812_v15  ;;  %v403_v17 = vpack.c.bf16 %v347_v5, %v346_v4 }
 0x10f   : > { %v1822_v19 = vmul.f32 -1.442695, %v555_v18  ;;  %593 = vmatmul.bf16.gmra.mxu0 %v401_v16  ;;  %791 = vmatmul.bf16.vlgmr.msra.gmra.mxu3 %v2760_v44 }
 0x110   : > { %v643_v20 = vpop.f32.mrf.mxu1 }
 0x111   : > { %2037 = vpow2.f32 %v1822_v19  ;;  %771 = vmatmul.bf16.gmra.mxu2 %v401_v16  ;;  %v644_v37 = vadd.f32 %v643_v20, %v2819_v32 }
 0x112   : > { %v614_v21 = vpop.f32.mrf.mxu3 }
 0x113   : > { %682 = vmatmul.bf16.gmra.mxu1 %v401_v16  ;;  %v615_v33 = vadd.f32 %v614_v21, %v2812_v15  ;;  %v1420_v50 = vmax.f32 %v644_v37, 0.0 }
 0x114   : > { %v556_v22 = vpop.f32.mrf.mxu0  ;;  %v732_v24 = vpop.f32.mrf.mxu2 }
 0x115   : > { %v557_v23 = vadd.f32 %v556_v22, %v2812_v15  ;;  %v1846_v41 = vmul.f32 -1.442695, %v615_v33  ;;  %v733_v51 = vadd.f32 %v732_v24, %v2824_v38 }
 0x117   : > { %v2038_v25 = vpop.eup %2037  ;;  %v1823_v26 = vmul.f32 -1.442695, %v557_v23  ;;  %v1452_v61 = vsub.f32 %v1420_v50, %v733_v51 }
 0x118   : > { %v908_v27 = vadd.f32 1.0, %v2038_v25  ;;  %v645_v30 = vpop.f32.mrf.mxu1 }
 0x119   : > { %2039 = vpow2.f32 %v1823_v26  ;;  %v646_v59 = vadd.f32 %v645_v30, %v2819_v32 }
 0x11a   : > { %2041 = vrcp.f32 %v908_v27  ;;  %v616_v31 = vpop.f32.mrf.mxu3  ;;  %v951_v54 = vand.u32 2147483648, %v908_v27  ;;  %v949_v56 = vand.u32 2147483647, %v908_v27  ;;  %vm945_vm1 = vweird.f32 %v908_v27 }
 0x11b   : > { %v617_v58 = vadd.f32 %v616_v31, %v2812_v15  ;;  %v1421_v14 = vmax.f32 %v646_v59, 0.0 }
 0x11c   : > { %v559_v35 = vpop.f32.mrf.mxu0  ;;  %v734_v39 = vpop.f32.mrf.mxu2  ;;  %v952_v3 = vor.u32 1.1754944e-38, %v951_v54  ;;  %vm950_vm3 = vcmp.eq.f32.partialorder %v949_v56, 8.507059e+37  ;;  %v349_v56 = vld [vmem:[%s2606_s11 + $0xb8] sm:$0xff] }
 0x11d   : > { %v560_v36 = vadd.f32 %v559_v35, %v2812_v15  ;;  %v1847_v10 = vmul.f32 -1.442695, %v617_v58  ;;  %v735_v19 = vadd.f32 %v734_v39, %v2824_v38 }
 0x11f   : > { %v2040_v40 = vpop.eup %2039  ;;  %v1824_v43 = vmul.f32 -1.442695, %v560_v36  ;;  %598 = vmatmul.bf16.gmra.mxu0 %v402_v34  ;;  %796 = vmatmul.bf16.gmra.mxu3 %v2772_v53  ;;  %v1453_v35 = vsub.f32 %v1421_v14, %v735_v19 }
 0x120   : > { %v2042_v44 = vpop.eup %2041  ;;  %v2827_v45 = vadd.f32 1.0, %v2040_v40  ;;  %v648_v49 = vpop.f32.mrf.mxu1 }
 0x121   : > { %v941_v47 = vmul.f32 %v2042_v44, %v908_v27  ;;  %2043 = vpow2.f32 %v1824_v43  ;;  %776 = vmatmul.bf16.gmra.mxu2 %v402_v34  ;;  %vm946_vm0 = vweird.f32 %v2042_v44  ;;  %v649_v30 = vadd.f32 %v648_v49, %v2819_v32 }
 0x122   : > { %2045 = vrcp.f32 %v2827_v45  ;;  %v2831_v52 = vpop.f32.mrf.mxu3  ;;  %vm947_vm2 = vmor %vm945_vm1, %vm946_vm0  ;;  %v964_v20 = vand.u32 2147483647, %v2827_v45  ;;  %v966_v21 = vand.u32 2147483648, %v2827_v45  ;;  %vm960_vm5 = vweird.f32 %v2827_v45 }
 0x123   : > { %2047 = vpow2.f32 %v1846_v41  ;;  %v942_v46 = vsub.f32 1.0, %v941_v47  ;;  %687 = vmatmul.bf16.gmra.mxu1 %v402_v34  ;;  %v620_v40 = vadd.f32 %v2831_v52, %v2812_v15 }
 0x124   : > { %v561_v55 = vpop.f32.mrf.mxu0  ;;  %v737_v62 = vpop.f32.mrf.mxu2  ;;  %v967_v34 = vor.u32 1.1754944e-38, %v966_v21  ;;  %vm965_vm7 = vcmp.eq.f32.partialorder %v964_v20, 8.507059e+37 }
 0x125   : > { %v943_v53 = vmul.f32 %v2042_v44, %v942_v46  ;;  %v562_v57 = vadd.f32 %v561_v55, %v2812_v15  ;;  %v1848_v58 = vmul.f32 -1.442695, %v620_v40 }
 0x127   : > { %v2044_v63 = vpop.eup %2043  ;;  %v944_v42 = vadd.f32 %v2042_v44, %v943_v53  ;;  %v1825_v0 = vmul.f32 -1.442695, %v562_v57  ;;  %v348_v53 = vld [vmem:[%s2606_s11 + $0xb0] sm:$0xff] }
 0x128   : > { %v2046_v1 = vpop.eup %2045  ;;  %v2836_v2 = vadd.f32 1.0, %v2044_v63  ;;  %v2841_v9 = vpop.f32.mrf.mxu1  ;;  %v2887_v5 = vpack.c.bf16 %v349_v56, %v348_v53 }
 0x129   : > { %v2048_v6 = vpop.eup %2047  ;;  %v956_v7 = vmul.f32 %v2046_v1, %v2827_v45  ;;  %v948_v8 = vsel %vm947_vm2, %v2042_v44, %v944_v42  ;;  %2049 = vpow2.f32 %v1825_v0  ;;  %vm961_vm4 = vweird.f32 %v2046_v1 }
 0x12a   : > { %2051 = vrcp.f32 %v2836_v2  ;;  %v953_v11 = vsel %vm950_vm3, %v952_v3, %v948_v8  ;;  %v2844_v12 = vpop.f32.mrf.mxu3  ;;  %v2846_v18 = vadd.f32 1.0, %v2048_v6  ;;  %vm962_vm6 = vmor %vm960_vm5, %vm961_vm4  ;;  %v1422_v44 = vmax.f32 %v649_v30, 0.0 }
 0x12b   : > { %v1484_v13 = vmul.f32 %v1452_v61, %v953_v11  ;;  %v957_v16 = vsub.f32 1.0, %v956_v7  ;;  %2053 = vpow2.f32 %v1847_v10  ;;  %v738_v45 = vadd.f32 %v737_v62, %v2824_v38 }
 0x12c   : > { %v564_v22 = vpop.f32.mrf.mxu0  ;;  %v2852_v26 = vpop.f32.mrf.mxu2  ;;  %2055 = vrcp.f32 %v2846_v18  ;;  %v979_v50 = vand.u32 2147483647, %v2836_v2  ;;  %vm975_vm9 = vweird.f32 %v2836_v2  ;;  %v651_v4 = vadd.f32 %v2841_v9, %v2819_v32 }
 0x12d   : > { %v1516_v23 = vadd.f32 %v1484_v13, %v733_v51  ;;  %v958_v24 = vmul.f32 %v2046_v1, %v957_v16  ;;  %v565_v25 = vadd.f32 %v564_v22, %v2812_v15  ;;  %v981_v51 = vand.u32 2147483648, %v2836_v2 }
 0x12e   : > { %v1454_v42 = vsub.f32 %v1422_v44, %v738_v45  ;;  %vm980_vm11 = vcmp.eq.f32.partialorder %v979_v50, 8.507059e+37  ;;  %v622_v9 = vadd.f32 %v2844_v12, %v2812_v15  ;;  %vm1305_vm12 = vweird.f32 %v2846_v18 }
 0x12f   : > { %v2050_v27 = vpop.eup %2049  ;;  %1548 = vst [vmem:[%s2606_s11] sm:$0xff] %v1516_v23  ;;  %v959_v28 = vadd.f32 %v2046_v1, %v958_v24  ;;  %v1826_v29 = vmul.f32 -1.442695, %v565_v25  ;;  %603 = vmatmul.bf16.gmra.mxu0 %v403_v17  ;;  %801 = vmatmul.bf16.gmra.mxu3 %v2780_v60  ;;  %v982_v3 = vor.u32 1.1754944e-38, %v981_v51 }
 0x130   : > { %v2052_v31 = vpop.eup %2051  ;;  %v2859_v33 = vadd.f32 1.0, %v2050_v27  ;;  %v2863_v39 = vpop.f32.mrf.mxu1 }
 0x131   : > { %v971_v36 = vmul.f32 %v2052_v31, %v2836_v2  ;;  %v963_v37 = vsel %vm962_vm6, %v2046_v1, %v959_v28  ;;  %2057 = vpow2.f32 %v1826_v29  ;;  %781 = vmatmul.bf16.gmra.mxu2 %v403_v17  ;;  %v2054_v49 = vpop.eup %2053  ;;  %vm976_vm8 = vweird.f32 %v2052_v31 }
 0x132   : > { %2059 = vrcp.f32 %v2859_v33  ;;  %v968_v60 = vsel %vm965_vm7, %v967_v34, %v963_v37  ;;  %v2868_v41 = vpop.f32.mrf.mxu3  ;;  %v2876_v57 = vpop.eup %2055  ;;  %vm977_vm10 = vmor %vm975_vm9, %vm976_vm8  ;;  %v2894_v10 = vadd.f32 1.0, %v2054_v49  ;;  %v994_v20 = vand.u32 2147483647, %v2859_v33 }
 0x133   : > { %v1485_v43 = vmul.f32 %v1453_v35, %v968_v60  ;;  %v972_v47 = vsub.f32 1.0, %v971_v36  ;;  %692 = vmatmul.bf16.gmra.mxu1 %v403_v17  ;;  %v1301_v2 = vmul.f32 %v2876_v57, %v2846_v18  ;;  %v1423_v17 = vmax.f32 %v651_v4, 0.0 }
 0x134   : > { %v566_v52 = vpop.f32.mrf.mxu0  ;;  %v2878_v61 = vpop.f32.mrf.mxu2  ;;  %v996_v21 = vand.u32 2147483648, %v2859_v33  ;;  %v1309_v28 = vand.u32 2147483647, %v2846_v18  ;;  %vm990_vm14 = vweird.f32 %v2859_v33  ;;  %v654_v34 = vadd.f32 %v2863_v39, %v2819_v32 }
 0x135   : > { %v1517_v46 = vadd.f32 %v1485_v43, %v735_v19  ;;  %v973_v54 = vmul.f32 %v2052_v31, %v972_v47  ;;  %v567_v55 = vadd.f32 %v566_v52, %v2812_v15  ;;  %v740_v19 = vadd.f32 %v2852_v26, %v2824_v38 }
 0x136   : > { %v1302_v27 = vsub.f32 1.0, %v1301_v2  ;;  %v1311_v26 = vand.u32 2147483648, %v2846_v18  ;;  %v1849_v36 = vmul.f32 -1.442695, %v622_v9  ;;  %vm995_vm0 = vcmp.eq.f32.partialorder %v994_v20, 8.507059e+37 }
 0x137   : > { %v2058_v62 = vpop.eup %2057  ;;  %1549 = vst [vmem:[%s2606_s11 + $0x8] sm:$0xff] %v1517_v46  ;;  %v974_v63 = vadd.f32 %v2052_v31, %v973_v54  ;;  %v1827_v0 = vmul.f32 -1.442695, %v567_v55  ;;  %v997_v40 = vor.u32 1.1754944e-38, %v996_v21  ;;  %v1455_v44 = vsub.f32 %v1423_v17, %v740_v19 }
 0x138   : > { %v2060_v59 = vpop.eup %2059  ;;  %v2882_v1 = vadd.f32 1.0, %v2058_v62  ;;  %v2890_v8 = vpop.f32.mrf.mxu1  ;;  %v625_v39 = vadd.f32 %v2868_v41, %v2812_v15  ;;  %v1303_v49 = vmul.f32 %v2876_v57, %v1302_v27  ;;  %v1424_v51 = vmax.f32 %v654_v34, 0.0 }
 0x139   : > { %v986_v6 = vmul.f32 %v2060_v59, %v2859_v33  ;;  %v978_v7 = vsel %vm977_vm10, %v2052_v31, %v974_v63  ;;  %2061 = vpow2.f32 %v1827_v0  ;;  %vm991_vm13 = vweird.f32 %v2060_v59 }
 0x13a   : > { %2063 = vrcp.f32 %v2882_v1  ;;  %v983_v11 = vsel %vm980_vm11, %v982_v3, %v978_v7  ;;  %v2897_v13 = vpop.f32.mrf.mxu3  ;;  %vm992_vm15 = vmor %vm990_vm14, %vm991_vm13  ;;  %v743_v52 = vadd.f32 %v2878_v61, %v2824_v38  ;;  %vm2933_vm1 = vcmp.eq.f32.partialorder %v1309_v28, 8.507059e+37 }
 0x13b   : > { %2065 = vpow2.f32 %v1848_v58  ;;  %v1486_v14 = vmul.f32 %v1454_v42, %v983_v11  ;;  %v987_v16 = vsub.f32 1.0, %v986_v6  ;;  %v1009_v55 = vand.u32 2147483647, %v2882_v1 }
 0x13c   : > { %v569_v22 = vpop.f32.mrf.mxu0  ;;  %2067 = vrcp.f32 %v2894_v10  ;;  %v2908_v12 = vpop.f32.mrf.mxu2  ;;  %v1011_v53 = vand.u32 2147483648, %v2882_v1  ;;  %vm1306_vm2 = vweird.f32 %v2876_v57  ;;  %v1850_v63 = vmul.f32 -1.442695, %v625_v39 }
 0x13d   : > { %v1518_v23 = vadd.f32 %v1486_v14, %v738_v45  ;;  %v988_v24 = vmul.f32 %v2060_v59, %v987_v16  ;;  %v570_v25 = vadd.f32 %v569_v22, %v2812_v15  ;;  %vm1005_vm4 = vweird.f32 %v2882_v1  ;;  %vm2955_vm5 = vmor %vm1305_vm12, %vm1306_vm2 }
 0x13e   : > { %v1304_v0 = vadd.f32 %v2876_v57, %v1303_v49  ;;  %v627_v4 = vadd.f32 %v2897_v13, %v2812_v15  ;;  %v1456_v6 = vsub.f32 %v1424_v51, %v743_v52  ;;  %v1012_v14 = vor.u32 1.1754944e-38, %v1011_v53 }
 0x13f   : > { %v2062_v29 = vpop.eup %2061  ;;  %1550 = vst [vmem:[%s2606_s11 + $0x10] sm:$0xff] %v1518_v23  ;;  %v989_v30 = vadd.f32 %v2060_v59, %v988_v24  ;;  %v1828_v31 = vmul.f32 -1.442695, %v570_v25  ;;  %608 = vmatmul.bf16.gmra.mxu0 %v2887_v5  ;;  %806 = vmatmul.bf16.gmra.mxu3 %v2791_v48  ;;  %v656_v13 = vadd.f32 %v2890_v8, %v2819_v32  ;;  %vm1010_vm7 = vcmp.eq.f32.partialorder %v1009_v55, 8.507059e+37 }
 0x140   : > { %v2064_v35 = vpop.eup %2063  ;;  %v2918_v37 = vadd.f32 1.0, %v2062_v29  ;;  %v2922_v45 = vpop.f32.mrf.mxu1  ;;  %v1308_v8 = vsel %vm2955_vm5, %v2876_v57, %v1304_v0  ;;  %v1851_v23 = vmul.f32 -1.442695, %v627_v4  ;;  %v745_v28 = vadd.f32 %v2908_v12, %v2824_v38 }
 0x141   : > { %v2066_v60 = vpop.eup %2065  ;;  %v1001_v43 = vmul.f32 %v2064_v35, %v2882_v1  ;;  %v993_v33 = vsel %vm992_vm15, %v2060_v59, %v989_v30  ;;  %2069 = vpow2.f32 %v1828_v31  ;;  %786 = vmatmul.bf16.gmra.mxu2 %v2887_v5  ;;  %vm1006_vm3 = vweird.f32 %v2064_v35 }
 0x142   : > { %2071 = vrcp.f32 %v2918_v37  ;;  %v998_v48 = vsel %vm995_vm0, %v997_v40, %v993_v33  ;;  %v2927_v47 = vpop.f32.mrf.mxu3  ;;  %v2937_v41 = vpop.eup %2067  ;;  %v1312_v59 = vor.u32 1.1754944e-38, %v1311_v26  ;;  %v2959_v11 = vadd.f32 1.0, %v2066_v60  ;;  %vm1007_vm6 = vmor %vm1005_vm4, %vm1006_vm3 }
 0x143   : > { %v1487_v50 = vmul.f32 %v1455_v44, %v998_v48  ;;  %v1002_v46 = vsub.f32 1.0, %v1001_v43  ;;  %2073 = vpow2.f32 %v1849_v36  ;;  %697 = vmatmul.bf16.gmra.mxu1 %v2887_v5  ;;  %v2971_v20 = vmul.f32 %v2937_v41, %v2894_v10 }
 0x144   : > { %v571_v56 = vpop.f32.mrf.mxu0  ;;  %v2945_v42 = vpop.f32.mrf.mxu2  ;;  %v1425_v27 = vmax.f32 %v656_v13, 0.0  ;;  %v1024_v26 = vand.u32 2147483647, %v2918_v37  ;;  %v1026_v29 = vand.u32 2147483648, %v2918_v37  ;;  %v630_v36 = vadd.f32 %v2927_v47, %v2812_v15 }
 0x145   : > { %v1519_v58 = vadd.f32 %v1487_v50, %v740_v19  ;;  %v1003_v61 = vmul.f32 %v2064_v35, %v1002_v46  ;;  %v572_v62 = vadd.f32 %v571_v56, %v2812_v15  ;;  %v2991_v12 = vsel %vm2933_vm1, %v1312_v59, %v1308_v8 }
 0x146   : > { %vm1020_vm9 = vweird.f32 %v2918_v37  ;;  %v659_v44 = vadd.f32 %v2922_v45, %v2819_v32  ;;  %vm1025_vm11 = vcmp.eq.f32.partialorder %v1024_v26, 8.507059e+37  ;;  %v1027_v47 = vor.u32 1.1754944e-38, %v1026_v29 }
 0x147   : > { %v2070_v3 = vpop.eup %2069  ;;  %1551 = vst [vmem:[%s2606_s11 + $0x18] sm:$0xff] %v1519_v58  ;;  %v1004_v5 = vadd.f32 %v2064_v35, %v1003_v61  ;;  %v1829_v7 = vmul.f32 -1.442695, %v572_v62  ;;  %v1317_v55 = vsub.f32 1.0, %v2971_v20  ;;  %v748_v58 = vadd.f32 %v2945_v42, %v2824_v38 }
 0x148   : > { %v2072_v1 = vpop.eup %2071  ;;  %v2961_v9 = vadd.f32 1.0, %v2070_v3  ;;  %v2967_v18 = vpop.f32.mrf.mxu1  ;;  %v1426_v56 = vmax.f32 %v659_v44, 0.0  ;;  %vm1320_vm1 = vweird.f32 %v2894_v10  ;;  %vm1321_vm2 = vweird.f32 %v2937_v41 }
 0x149   : > { %v1016_v16 = vmul.f32 %v2072_v1, %v2918_v37  ;;  %v1008_v17 = vsel %vm1007_vm6, %v2064_v35, %v1004_v5  ;;  %2075 = vpow2.f32 %v1829_v7  ;;  %v2074_v19 = vpop.eup %2073  ;;  %vm1021_vm8 = vweird.f32 %v2072_v1  ;;  %vm3078_vm6 = vmor %vm1320_vm1, %vm1321_vm2 }
 0x14a   : > { %2077 = vrcp.f32 %v2961_v9  ;;  %v1013_v21 = vsel %vm1010_vm7, %v1012_v14, %v1008_v17  ;;  %v631_v22 = vpop.f32.mrf.mxu3  ;;  %v2983_v57 = vadd.f32 1.0, %v2074_v19  ;;  %vm1022_vm10 = vmor %vm1020_vm9, %vm1021_vm8  ;;  %v1852_v37 = vmul.f32 -1.442695, %v630_v36 }
 0x14b   : > { %2079 = vpow2.f32 %v1850_v63  ;;  %v1488_v24 = vmul.f32 %v1456_v6, %v1013_v21  ;;  %v1017_v25 = vsub.f32 1.0, %v1016_v16  ;;  %v632_v63 = vadd.f32 %v631_v22, %v2812_v15 }
 0x14c   : > { %v574_v30 = vpop.f32.mrf.mxu0  ;;  %2081 = vrcp.f32 %v2959_v11  ;;  %v2987_v40 = vpop.f32.mrf.mxu2  ;;  %v1039_v0 = vand.u32 2147483647, %v2961_v9  ;;  %v1041_v59 = vand.u32 2147483648, %v2961_v9  ;;  %vm1035_vm13 = vweird.f32 %v2961_v9 }
 0x14d   : > { %v1520_v31 = vadd.f32 %v1488_v24, %v743_v52  ;;  %v1018_v34 = vmul.f32 %v2072_v1, %v1017_v25  ;;  %v575_v35 = vadd.f32 %v574_v30, %v2812_v15  ;;  %2083 = vpow2.f32 %v1851_v23 }
 0x14e   : > { %v1457_v52 = vsub.f32 %v1425_v27, %v745_v28  ;;  %v1458_v16 = vsub.f32 %v1426_v56, %v748_v58  ;;  %v661_v19 = vadd.f32 %v2967_v18, %v2819_v32  ;;  %v1853_v22 = vmul.f32 -1.442695, %v632_v63 }
 0x14f   : > { %v2076_v60 = vpop.eup %2075  ;;  %1552 = vst [vmem:[%s2606_s11 + $0x20] sm:$0xff] %v1520_v31  ;;  %v1019_v43 = vadd.f32 %v2072_v1, %v1018_v34  ;;  %v1830_v33 = vmul.f32 -1.442695, %v575_v35  ;;  %vm1040_vm15 = vcmp.eq.f32.partialorder %v1039_v0, 8.507059e+37  ;;  %v750_v36 = vadd.f32 %v2987_v40, %v2824_v38 }
 0x150   : > { %v2078_v39 = vpop.eup %2077  ;;  %v2997_v48 = vadd.f32 1.0, %v2076_v60  ;;  %v3001_v46 = vpop.f32.mrf.mxu1  ;;  %v1427_v31 = vmax.f32 %v661_v19, 0.0 }
 0x151   : > { %v2080_v49 = vpop.eup %2079  ;;  %v1031_v50 = vmul.f32 %v2078_v39, %v2961_v9  ;;  %v1023_v51 = vsel %vm1022_vm10, %v2072_v1, %v1019_v43  ;;  %2085 = vpow2.f32 %v1830_v33  ;;  %vm1036_vm12 = vweird.f32 %v2078_v39 }
 0x152   : > { %2087 = vrcp.f32 %v2997_v48  ;;  %v1028_v45 = vsel %vm1025_vm11, %v1027_v47, %v1023_v51  ;;  %v3004_v54 = vpop.f32.mrf.mxu3  ;;  %v3009_v62 = vpop.eup %2081  ;;  %v3016_v42 = vadd.f32 1.0, %v2080_v49  ;;  %v1318_v1 = vmul.f32 %v2937_v41, %v1317_v55  ;;  %vm1037_vm14 = vmor %vm1035_vm13, %vm1036_vm12 }
 0x153   : > { %v1489_v53 = vmul.f32 %v1457_v52, %v1028_v45  ;;  %v1032_v61 = vsub.f32 1.0, %v1031_v50  ;;  %2089 = vrcp.f32 %v2983_v57  ;;  %v2084_v7 = vpop.eup %2083  ;;  %v3027_v21 = vmul.f32 %v3009_v62, %v2959_v11 }
 0x154   : > { %v576_v3 = vpop.f32.mrf.mxu0  ;;  %2091 = vpow2.f32 %v1852_v37  ;;  %v3019_v2 = vpop.f32.mrf.mxu2  ;;  %v1042_v9 = vor.u32 1.1754944e-38, %v1041_v59  ;;  %v3037_v18 = vadd.f32 1.0, %v2084_v7  ;;  %v3043_v29 = vadd.f32 %v2937_v41, %v1318_v1 }
 0x155   : > { %v1521_v4 = vadd.f32 %v1489_v53, %v745_v28  ;;  %v1033_v5 = vmul.f32 %v2078_v39, %v1032_v61  ;;  %v577_v6 = vadd.f32 %v576_v3, %v2812_v15  ;;  %v1054_v60 = vand.u32 2147483647, %v2997_v48 }
 0x156   : > { %v1056_v43 = vand.u32 2147483648, %v2997_v48  ;;  %vm1050_vm3 = vweird.f32 %v2997_v48  ;;  %v664_v37 = vadd.f32 %v3001_v46, %v2819_v32  ;;  %v1459_v0 = vsub.f32 %v1427_v31, %v750_v36 }
 0x157   : > { %v2086_v14 = vpop.eup %2085  ;;  %1553 = vst [vmem:[%s2606_s11 + $0x28] sm:$0xff] %v1521_v4  ;;  %v1034_v13 = vadd.f32 %v2078_v39, %v1033_v5  ;;  %v1831_v17 = vmul.f32 -1.442695, %v577_v6  ;;  %vm1055_vm5 = vcmp.eq.f32.partialorder %v1054_v60, 8.507059e+37  ;;  %v1324_v5 = vand.u32 2147483647, %v2894_v10 }
 0x158   : > { %v2088_v20 = vpop.eup %2087  ;;  %v3029_v8 = vadd.f32 1.0, %v2086_v14  ;;  %v3033_v25 = vpop.f32.mrf.mxu1  ;;  %v1057_v56 = vor.u32 1.1754944e-38, %v1056_v43  ;;  %v1326_v6 = vand.u32 2147483648, %v2894_v10  ;;  %v1428_v1 = vmax.f32 %v664_v37, 0.0 }
 0x159   : > { %v1046_v23 = vmul.f32 %v2088_v20, %v2997_v48  ;;  %v1038_v24 = vsel %vm1037_vm14, %v2078_v39, %v1034_v13  ;;  %2093 = vpow2.f32 %v1831_v17  ;;  %v3035_v27 = vpop.eup %2089  ;;  %vm1051_vm0 = vweird.f32 %v2088_v20 }
 0x15a   : > { %2095 = vrcp.f32 %v3029_v8  ;;  %v1043_v28 = vsel %vm1040_vm15, %v1042_v9, %v1038_v24  ;;  %v3040_v26 = vpop.f32.mrf.mxu3  ;;  %v2092_v35 = vpop.eup %2091  ;;  %v3053_v49 = vmul.f32 %v3035_v27, %v2983_v57  ;;  %vm1052_vm4 = vmor %vm1050_vm3, %vm1051_vm0  ;;  %v753_v14 = vadd.f32 %v3019_v2, %v2824_v38 }
 0x15b   : > { %2097 = vrcp.f32 %v3016_v42  ;;  %v1490_v30 = vmul.f32 %v1458_v16, %v1043_v28  ;;  %v1047_v34 = vsub.f32 1.0, %v1046_v23  ;;  %v3064_v55 = vadd.f32 1.0, %v2092_v35 }
 0x15c   : > { %2099 = vpow2.f32 %v1853_v22  ;;  %v579_v33 = vpop.f32.mrf.mxu0  ;;  %v3056_v50 = vpop.f32.mrf.mxu2  ;;  %v1069_v17 = vand.u32 2147483647, %v3029_v8  ;;  %v1071_v19 = vand.u32 2147483648, %v3029_v8  ;;  %v1323_v10 = vsel %vm3078_vm6, %v2937_v41, %v3043_v29 }
 0x15d   : > { %v1522_v44 = vadd.f32 %v1490_v30, %v748_v58  ;;  %v1048_v39 = vmul.f32 %v2088_v20, %v1047_v34  ;;  %v580_v47 = vadd.f32 %v579_v33, %v2812_v15  ;;  %2101 = vrcp.f32 %v3037_v18 }
 0x15e   : > { %vm3107_vm8 = vcmp.eq.f32.partialorder %v1324_v5, 8.507059e+37  ;;  %v1327_v31 = vor.u32 1.1754944e-38, %v1326_v6  ;;  %vm1065_vm9 = vweird.f32 %v3029_v8  ;;  %v1460_v29 = vsub.f32 %v1428_v1, %v753_v14 }
 0x15f   : > { %v2094_v40 = vpop.eup %2093  ;;  %1554 = vst [vmem:[%s2606_s11 + $0x30] sm:$0xff] %v1522_v44  ;;  %v1049_v51 = vadd.f32 %v2088_v20, %v1048_v39  ;;  %v1832_v52 = vmul.f32 -1.442695, %v580_v47  ;;  %v1072_v33 = vor.u32 1.1754944e-38, %v1071_v19  ;;  %v666_v44 = vadd.f32 %v3033_v25, %v2819_v32 }
 0x160   : > { %v2096_v45 = vpop.eup %2095  ;;  %v3066_v53 = vadd.f32 1.0, %v2094_v40  ;;  %v3072_v48 = vpop.f32.mrf.mxu1  ;;  %vm1070_vm11 = vcmp.eq.f32.partialorder %v1069_v17, 8.507059e+37  ;;  %v1332_v25 = vsub.f32 1.0, %v3027_v21  ;;  %vm1335_vm13 = vweird.f32 %v2959_v11 }
 0x161   : > { %v3069_v58 = vpop.eup %2097  ;;  %v1061_v61 = vmul.f32 %v2096_v45, %v3029_v8  ;;  %v1053_v63 = vsel %vm1052_vm4, %v2088_v20, %v1049_v51  ;;  %2103 = vpow2.f32 %v1832_v52  ;;  %vm1066_vm7 = vweird.f32 %v2096_v45 }
 0x162   : > { %v2100_v59 = vpop.eup %2099  ;;  %2105 = vrcp.f32 %v3066_v53  ;;  %v1058_v3 = vsel %vm1055_vm5, %v1057_v56, %v1053_v63  ;;  %v3083_v4 = vpop.f32.mrf.mxu3  ;;  %v3101_v23 = vmul.f32 %v3069_v58, %v3016_v42  ;;  %vm1067_vm10 = vmor %vm1065_vm9, %vm1066_vm7  ;;  %v3129_v51 = vadd.f32 %v3004_v54, %v2819_v32 }
 0x163   : > { %v1491_v7 = vmul.f32 %v1459_v0, %v1058_v3  ;;  %v1062_v13 = vsub.f32 1.0, %v1061_v61  ;;  %v3089_v16 = vpop.eup %2101  ;;  %2107 = vrcp.f32 %v3064_v55  ;;  %v3103_v24 = vadd.f32 1.0, %v2100_v59 }
 0x164   : > { %v581_v20 = vpop.f32.mrf.mxu0  ;;  %v3105_v28 = vpop.f32.mrf.mxu2  ;;  %v3115_v60 = vmul.f32 %v3089_v16, %v3037_v18  ;;  %v3138_v61 = vsel %vm3107_vm8, %v1327_v31, %v1323_v10  ;;  %v1429_v63 = vmax.f32 %v666_v44, 0.0  ;;  %v755_v54 = vadd.f32 %v3056_v50, %v2824_v38 }
 0x165   : > { %v1523_v22 = vadd.f32 %v1491_v7, %v750_v36  ;;  %v1063_v9 = vmul.f32 %v2096_v45, %v1062_v13  ;;  %v582_v2 = vadd.f32 %v581_v20, %v2812_v15  ;;  %v1084_v0 = vand.u32 2147483647, %v3066_v53 }
 0x166   : > { %v1086_v46 = vand.u32 2147483648, %v3066_v53  ;;  %v1444_v7 = vmax.f32 %v3129_v51, 0.0  ;;  %v1333_v50 = vmul.f32 %v3009_v62, %v1332_v25  ;;  %vm1080_vm14 = vweird.f32 %v3066_v53 }
 0x167   : > { %v2104_v34 = vpop.eup %2103  ;;  %1555 = vst [vmem:[%s2606_s11 + $0x38] sm:$0xff] %v1523_v22  ;;  %v1064_v41 = vadd.f32 %v2096_v45, %v1063_v9  ;;  %v1833_v35 = vmul.f32 -1.442695, %v582_v2  ;;  %v669_v19 = vadd.f32 %v3072_v48, %v2819_v32  ;;  %v3160_v10 = vadd.f32 %v3040_v26, %v2819_v32 }
 0x168   : > { %v2106_v36 = vpop.eup %2105  ;;  %v3117_v43 = vadd.f32 1.0, %v2104_v34  ;;  %v3123_v8 = vpop.f32.mrf.mxu1  ;;  %vm1085_vm0 = vcmp.eq.f32.partialorder %v1084_v0, 8.507059e+37  ;;  %v1087_v9 = vor.u32 1.1754944e-38, %v1086_v46  ;;  %v1461_v31 = vsub.f32 %v1429_v63, %v755_v54 }
 0x169   : > { %v1076_v39 = vmul.f32 %v2106_v36, %v3066_v53  ;;  %v1068_v47 = vsel %vm1067_vm10, %v2096_v45, %v1064_v41  ;;  %2109 = vpow2.f32 %v1833_v35  ;;  %v3125_v40 = vpop.eup %2107  ;;  %vm1081_vm12 = vweird.f32 %v2106_v36 }
 0x16a   : > { %2111 = vrcp.f32 %v3117_v43  ;;  %v1073_v52 = vsel %vm1070_vm11, %v1072_v33, %v1068_v47  ;;  %v3132_v37 = vpop.f32.mrf.mxu3  ;;  %v3147_v6 = vmul.f32 %v3125_v40, %v3064_v55  ;;  %vm1082_vm15 = vmor %vm1080_vm14, %vm1081_vm12  ;;  %v1334_v41 = vadd.f32 %v3009_v62, %v1333_v50 }
 0x16b   : > { %2113 = vrcp.f32 %v3103_v24  ;;  %v1492_v45 = vmul.f32 %v1460_v29, %v1073_v52  ;;  %v1077_v56 = vsub.f32 1.0, %v1076_v39  ;;  %vm1336_vm1 = vweird.f32 %v3009_v62 }
 0x16c   : > { %v584_v59 = vpop.f32.mrf.mxu0  ;;  %v3150_v1 = vpop.f32.mrf.mxu2  ;;  %v1430_v35 = vmax.f32 %v669_v19, 0.0  ;;  %v758_v33 = vadd.f32 %v3105_v28, %v2824_v38  ;;  %v1099_v39 = vand.u32 2147483647, %v3117_v43  ;;  %v1101_v47 = vand.u32 2147483648, %v3117_v43  ;;  %vm3184_vm3 = vmor %vm1335_vm13, %vm1336_vm1 }
 0x16d   : > { %v1524_v3 = vadd.f32 %v1492_v45, %v753_v14  ;;  %v1078_v21 = vmul.f32 %v2106_v36, %v1077_v56  ;;  %v585_v5 = vadd.f32 %v584_v59, %v2812_v15  ;;  %v1339_v25 = vand.u32 2147483647, %v2959_v11 }
 0x16e   : > { %v3194_v46 = vadd.f32 %v3083_v4, %v2819_v32  ;;  %vm1095_vm4 = vweird.f32 %v3117_v43  ;;  %v1462_v50 = vsub.f32 %v1430_v35, %v758_v33  ;;  %v1102_v4 = vor.u32 1.1754944e-38, %v1101_v47 }
 0x16f   : > { %v2110_v13 = vpop.eup %2109  ;;  %1556 = vst [vmem:[%s2606_s11 + $0x40] sm:$0xff] %v1524_v3  ;;  %v1079_v17 = vadd.f32 %v2106_v36, %v1078_v21  ;;  %v1834_v14 = vmul.f32 -1.442695, %v585_v5  ;;  %v1347_v3 = vsub.f32 1.0, %v3053_v49  ;;  %v671_v19 = vadd.f32 %v3123_v8, %v2819_v32 }
 0x170   : > { %v2112_v20 = vpop.eup %2111  ;;  %v3162_v22 = vadd.f32 1.0, %v2110_v13  ;;  %v3168_v34 = vpop.f32.mrf.mxu1  ;;  %vm1100_vm6 = vcmp.eq.f32.partialorder %v1099_v39, 8.507059e+37  ;;  %vm3216_vm7 = vcmp.eq.f32.partialorder %v1339_v25, 8.507059e+37  ;;  %v760_v35 = vadd.f32 %v3150_v1, %v2824_v38 }
 0x171   : > { %v3165_v2 = vpop.eup %2113  ;;  %v1091_v30 = vmul.f32 %v2112_v20, %v3117_v43  ;;  %v1083_v53 = vsel %vm1082_vm15, %v2106_v36, %v1079_v17  ;;  %2115 = vpow2.f32 %v1834_v14  ;;  %v1445_v36 = vmax.f32 %v3160_v10, 0.0 }
 0x172   : > { %2117 = vrcp.f32 %v3162_v22  ;;  %v1088_v48 = vsel %vm1085_vm0, %v1087_v9, %v1083_v53  ;;  %v3171_v26 = vpop.f32.mrf.mxu3  ;;  %vm1096_vm2 = vweird.f32 %v2112_v20  ;;  %v3190_v0 = vmul.f32 %v3165_v2, %v3103_v24 }
 0x173   : > { %v1493_v29 = vmul.f32 %v1461_v31, %v1088_v48  ;;  %v1092_v44 = vsub.f32 1.0, %v1091_v30  ;;  %vm1097_vm5 = vmor %vm1095_vm4, %vm1096_vm2  ;;  %v1446_v48 = vmax.f32 %v3194_v46, 0.0  ;;  %v1116_v39 = vand.u32 2147483648, %v3162_v22 }
 0x174   : > { %v586_v52 = vpop.f32.mrf.mxu0  ;;  %v3196_v59 = vpop.f32.mrf.mxu2  ;;  %vm1350_vm9 = vweird.f32 %v2983_v57  ;;  %vm1351_vm10 = vweird.f32 %v3035_v27  ;;  %vm1110_vm11 = vweird.f32 %v3162_v22 }
 0x175   : > { %v1525_v45 = vadd.f32 %v1493_v29, %v755_v54  ;;  %v1093_v56 = vmul.f32 %v2112_v20, %v1092_v44  ;;  %v587_v63 = vadd.f32 %v586_v52, %v2812_v15  ;;  %v1341_v54 = vand.u32 2147483648, %v2959_v11  ;;  %vm3252_vm14 = vmor %vm1350_vm9, %vm1351_vm10 }
 0x176   : > { %v1338_v11 = vsel %vm3184_vm3, %v3009_v62, %v1334_v41  ;;  %v1431_v29 = vmax.f32 %v671_v19, 0.0  ;;  %v1114_v44 = vand.u32 2147483647, %v3162_v22  ;;  %vm1365_vm3 = vweird.f32 %v3016_v42 }
 0x177   : > { %v2116_v21 = vpop.eup %2115  ;;  %1557 = vst [vmem:[%s2606_s11 + $0x48] sm:$0xff] %v1525_v45  ;;  %v1094_v5 = vadd.f32 %v2112_v20, %v1093_v56  ;;  %v1835_v13 = vmul.f32 -1.442695, %v587_v63  ;;  %v1342_v8 = vor.u32 1.1754944e-38, %v1341_v54  ;;  %v3229_v56 = vadd.f32 %v3132_v37, %v2819_v32 }
 0x178   : > { %v2118_v17 = vpop.eup %2117  ;;  %v3202_v14 = vadd.f32 1.0, %v2116_v21  ;;  %v3211_v43 = vpop.f32.mrf.mxu1  ;;  %v674_v37 = vadd.f32 %v3168_v34, %v2819_v32  ;;  %vm1115_vm13 = vcmp.eq.f32.partialorder %v1114_v44, 8.507059e+37  ;;  %v1463_v19 = vsub.f32 %v1431_v29, %v760_v35 }
 0x179   : > { %v1106_v49 = vmul.f32 %v2118_v17, %v3162_v22  ;;  %v1098_v9 = vsel %vm1097_vm5, %v2112_v20, %v1094_v5  ;;  %2119 = vpow2.f32 %v1835_v13  ;;  %v1348_v20 = vmul.f32 %v3035_v27, %v1347_v3 }
 0x17a   : > { %2121 = vrcp.f32 %v3202_v14  ;;  %v1103_v30 = vsel %vm1100_vm6, %v1102_v4, %v1098_v9  ;;  %v3214_v53 = vpop.f32.mrf.mxu3  ;;  %vm1111_vm8 = vweird.f32 %v2118_v17  ;;  %v3235_v28 = vsel %vm3216_vm7, %v1342_v8, %v1338_v11 }
 0x17b   : > { %v1494_v62 = vmul.f32 %v1462_v50, %v1103_v30  ;;  %v1107_v41 = vsub.f32 1.0, %v1106_v49  ;;  %vm1112_vm12 = vmor %vm1110_vm11, %vm1111_vm8  ;;  %v1117_v5 = vor.u32 1.1754944e-38, %v1116_v39  ;;  %v1349_v50 = vadd.f32 %v3035_v27, %v1348_v20 }
 0x17c   : > { %v589_v47 = vpop.f32.mrf.mxu0  ;;  %v3231_v63 = vpop.f32.mrf.mxu2  ;;  %v1354_v9 = vand.u32 2147483647, %v2983_v57  ;;  %v1432_v31 = vmax.f32 %v674_v37, 0.0  ;;  %v763_v8 = vadd.f32 %v3196_v59, %v2824_v38  ;;  %v1129_v20 = vand.u32 2147483647, %v3202_v14 }
 0x17d   : > { %v1526_v52 = vadd.f32 %v1494_v62, %v758_v33  ;;  %v1108_v25 = vmul.f32 %v2118_v17, %v1107_v41  ;;  %v590_v45 = vadd.f32 %v589_v47, %v2812_v15  ;;  %v1447_v41 = vmax.f32 %v3229_v56, 0.0 }
 0x17e   : > { %v1131_v29 = vand.u32 2147483648, %v3202_v14  ;;  %v1353_v39 = vsel %vm3252_vm14, %v3035_v27, %v1349_v50  ;;  %v3272_v59 = vadd.f32 %v3171_v26, %v2819_v32  ;;  %vm3276_vm0 = vcmp.eq.f32.partialorder %v1354_v9, 8.507059e+37 }
 0x17f   : > { %v2120_v1 = vpop.eup %2119  ;;  %1558 = vst [vmem:[%s2606_s11 + $0x50] sm:$0xff] %v1526_v52  ;;  %v1109_v33 = vadd.f32 %v2118_v17, %v1108_v25  ;;  %v1836_v54 = vmul.f32 -1.442695, %v590_v45  ;;  %vm1125_vm1 = vweird.f32 %v3202_v14  ;;  %vm1130_vm4 = vcmp.eq.f32.partialorder %v1129_v20, 8.507059e+37 }
 0x180   : > { %v2122_v3 = vpop.eup %2121  ;;  %v3243_v21 = vadd.f32 1.0, %v2120_v1  ;;  %v678_v11 = vpop.f32.mrf.mxu1  ;;  %v1132_v26 = vor.u32 1.1754944e-38, %v1131_v29  ;;  %vm1366_vm5 = vweird.f32 %v3069_v58 }
 0x181   : > { %v1121_v13 = vmul.f32 %v2122_v3, %v3202_v14  ;;  %v1113_v4 = vsel %vm1112_vm12, %v2118_v17, %v1109_v33  ;;  %2123 = vpow2.f32 %v1836_v54  ;;  %v1356_v17 = vand.u32 2147483648, %v2983_v57  ;;  %vm3321_vm8 = vmor %vm1365_vm3, %vm1366_vm5 }
 0x182   : > { %2125 = vrcp.f32 %v3243_v21  ;;  %v1118_v34 = vsel %vm1115_vm13, %v1117_v5, %v1113_v4  ;;  %v3257_v49 = vpop.f32.mrf.mxu3  ;;  %vm1126_vm15 = vweird.f32 %v2122_v3  ;;  %v1362_v33 = vsub.f32 1.0, %v3101_v23 }
 0x183   : > { %v1495_v30 = vmul.f32 %v1463_v19, %v1118_v34  ;;  %v1122_v62 = vsub.f32 1.0, %v1121_v13  ;;  %v1357_v1 = vor.u32 1.1754944e-38, %v1356_v17  ;;  %vm1127_vm2 = vmor %vm1125_vm1, %vm1126_vm15  ;;  %v676_v13 = vadd.f32 %v3211_v43, %v2819_v32 }
 0x184   : > { %v591_v44 = vpop.f32.mrf.mxu0  ;;  %v3274_v25 = vpop.f32.mrf.mxu2  ;;  %v1363_v34 = vmul.f32 %v3069_v58, %v1362_v33  ;;  %v1448_v43 = vmax.f32 %v3272_v59, 0.0  ;;  %v1146_v20 = vand.u32 2147483648, %v3243_v21  ;;  %vm1140_vm7 = vweird.f32 %v3243_v21 }
 0x185   : > { %v1527_v47 = vadd.f32 %v1495_v30, %v760_v35  ;;  %v1123_v57 = vmul.f32 %v2122_v3, %v1122_v62  ;;  %v592_v52 = vadd.f32 %v591_v44, %v2812_v15  ;;  %v1464_v35 = vsub.f32 %v1432_v31, %v763_v8 }
 0x186   : > { %v1433_v30 = vmax.f32 %v676_v13, 0.0  ;;  %v765_v31 = vadd.f32 %v3231_v63, %v2824_v38  ;;  %v1144_v62 = vand.u32 2147483647, %v3243_v21  ;;  %v1371_v63 = vand.u32 2147483648, %v3016_v42 }
 0x187   : > { %v2124_v54 = vpop.eup %2123  ;;  %1559 = vst [vmem:[%s2606_s11 + $0x58] sm:$0xff] %v1527_v47  ;;  %v1124_v27 = vadd.f32 %v2122_v3, %v1123_v57  ;;  %v1837_v37 = vmul.f32 -1.442695, %v592_v52  ;;  %v679_v52 = vadd.f32 %v678_v11, %v2819_v32 }
 0x188   : > { %v2126_v5 = vpop.eup %2125  ;;  %v3283_v50 = vadd.f32 1.0, %v2124_v54  ;;  %v3290_v19 = vpop.f32.mrf.mxu1  ;;  %vm1145_vm10 = vcmp.eq.f32.partialorder %v1144_v62, 8.507059e+37 }
 0x189   : > { %v1136_v23 = vmul.f32 %v2126_v5, %v3243_v21  ;;  %v1128_v4 = vsel %vm1127_vm2, %v2122_v3, %v1124_v27  ;;  %2127 = vpow2.f32 %v1837_v37  ;;  %v3300_v3 = vsel %vm3276_vm0, %v1357_v1, %v1353_v39 }
 0x18a   : > { %2129 = vrcp.f32 %v3283_v50  ;;  %v1133_v14 = vsel %vm1130_vm4, %v1132_v26, %v1128_v4  ;;  %v3293_v22 = vpop.f32.mrf.mxu3  ;;  %vm1141_vm6 = vweird.f32 %v2126_v5  ;;  %v3311_v39 = vadd.f32 %v3069_v58, %v1363_v34 }
 0x18b   : > { %v1496_v9 = vmul.f32 %v1464_v35, %v1133_v14  ;;  %v1137_v17 = vsub.f32 1.0, %v1136_v23  ;;  %v1369_v1 = vand.u32 2147483647, %v3016_v42  ;;  %v1377_v27 = vsub.f32 1.0, %v3115_v60  ;;  %vm1142_vm9 = vmor %vm1140_vm7, %vm1141_vm6 }
 0x18c   : > { %v594_v29 = vpop.f32.mrf.mxu0  ;;  %v3308_v45 = vpop.f32.mrf.mxu2  ;;  %v3328_v37 = vadd.f32 %v3214_v53, %v2819_v32  ;;  %v1147_v21 = vor.u32 1.1754944e-38, %v1146_v20  ;;  %v1465_v23 = vsub.f32 %v1433_v30, %v765_v31  ;;  %v1434_v14 = vmax.f32 %v679_v52, 0.0 }
 0x18d   : > { %v1528_v44 = vadd.f32 %v1496_v9, %v763_v8  ;;  %v1138_v47 = vmul.f32 %v2126_v5, %v1137_v17  ;;  %v595_v57 = vadd.f32 %v594_v29, %v2812_v15  ;;  %v768_v53 = vadd.f32 %v3274_v25, %v2824_v38 }
 0x18e   : > { %v1449_v30 = vmax.f32 %v3328_v37, 0.0  ;;  %v1159_v62 = vand.u32 2147483647, %v3283_v50  ;;  %v1161_v20 = vand.u32 2147483648, %v3283_v50  ;;  %vm1155_vm12 = vweird.f32 %v3283_v50 }
 0x18f   : > { %v2128_v33 = vpop.eup %2127  ;;  %1560 = vst [vmem:[%s2606_s11 + $0x60] sm:$0xff] %v1528_v44  ;;  %v1139_v54 = vadd.f32 %v2126_v5, %v1138_v47  ;;  %v1838_v8 = vmul.f32 -1.442695, %v595_v57  ;;  %vm3351_vm13 = vcmp.eq.f32.partialorder %v1369_v1, 8.507059e+37  ;;  %v681_v51 = vadd.f32 %v3290_v19, %v2819_v32 }
 0x190   : > { %v2130_v35 = vpop.eup %2129  ;;  %v3330_v26 = vadd.f32 1.0, %v2128_v33  ;;  %v683_v4 = vpop.f32.mrf.mxu1  ;;  %v1466_v33 = vsub.f32 %v1434_v14, %v768_v53  ;;  %vm1160_vm15 = vcmp.eq.f32.partialorder %v1159_v62, 8.507059e+37  ;;  %v1378_v1 = vmul.f32 %v3089_v16, %v1377_v27 }
 0x191   : > { %v1151_v13 = vmul.f32 %v2130_v35, %v3283_v50  ;;  %v1143_v42 = vsel %vm1142_vm9, %v2126_v5, %v1139_v54  ;;  %2131 = vpow2.f32 %v1838_v8  ;;  %v1368_v5 = vsel %vm3321_vm8, %v3069_v58, %v3311_v39 }
 0x192   : > { %2133 = vrcp.f32 %v3330_v26  ;;  %v1148_v60 = vsel %vm1145_vm10, %v1147_v21, %v1143_v42  ;;  %v792_v34 = vpop.f32.mrf.mxu3  ;;  %vm1156_vm11 = vweird.f32 %v2130_v35  ;;  %v1372_v54 = vor.u32 1.1754944e-38, %v1371_v63 }
 0x193   : > { %v1497_v9 = vmul.f32 %v1465_v23, %v1148_v60  ;;  %v1152_v17 = vsub.f32 1.0, %v1151_v13  ;;  %v793_v29 = vadd.f32 %v792_v34, %v2824_v38  ;;  %vm1157_vm14 = vmor %vm1155_vm12, %vm1156_vm11  ;;  %v1162_v50 = vor.u32 1.1754944e-38, %v1161_v20 }
 0x194   : > { %v596_v44 = vpop.f32.mrf.mxu0  ;;  %v3349_v58 = vpop.f32.mrf.mxu2  ;;  %v3369_v14 = vsel %vm3351_vm13, %v1372_v54, %v1368_v5  ;;  %vm1380_vm0 = vweird.f32 %v3037_v18  ;;  %v1435_v27 = vmax.f32 %v681_v51, 0.0  ;;  %v1176_v62 = vand.u32 2147483648, %v3330_v26 }
 0x195   : > { %v1529_v25 = vadd.f32 %v1497_v9, %v765_v31  ;;  %v1153_v47 = vmul.f32 %v2130_v35, %v1152_v17  ;;  %v1476_v57 = vsub.f32 %v1444_v7, %v793_v29  ;;  %v597_v52 = vadd.f32 %v596_v44, %v2812_v15 }
 0x196   : > { %v770_v17 = vadd.f32 %v3308_v45, %v2824_v38  ;;  %vm1381_vm2 = vweird.f32 %v3089_v16  ;;  %vm1170_vm3 = vweird.f32 %v3330_v26  ;;  %vm1395_vm12 = vweird.f32 %v3064_v55 }
 0x197   : > { %v2132_v8 = vpop.eup %2131  ;;  %1561 = vst [vmem:[%s2606_s11 + $0x68] sm:$0xff] %v1529_v25  ;;  %v1154_v11 = vadd.f32 %v2130_v35, %v1153_v47  ;;  %v1508_v31 = vmul.f32 %v1476_v57, %v2991_v12  ;;  %v1839_v21 = vmul.f32 -1.442695, %v597_v52  ;;  %v3383_v57 = vadd.f32 %v3257_v49, %v2819_v32  ;;  %vm3409_vm6 = vmor %vm1380_vm0, %vm1381_vm2 }
 0x198   : > { %v2134_v7 = vpop.eup %2133  ;;  %v3359_v13 = vadd.f32 1.0, %v2132_v8  ;;  %v3364_v12 = vpop.f32.mrf.mxu1  ;;  %v684_v52 = vadd.f32 %v683_v4, %v2819_v32  ;;  %v1177_v4 = vor.u32 1.1754944e-38, %v1176_v62  ;;  %v1467_v8 = vsub.f32 %v1435_v27, %v770_v17 }
 0x199   : > { %v1166_v63 = vmul.f32 %v2134_v7, %v3330_v26  ;;  %v1158_v42 = vsel %vm1157_vm14, %v2130_v35, %v1154_v11  ;;  %v1540_v23 = vadd.f32 %v1508_v31, %v793_v29  ;;  %2135 = vpow2.f32 %v1839_v21 }
 0x19a   : > { %2137 = vrcp.f32 %v3359_v13  ;;  %v1163_v19 = vsel %vm1160_vm15, %v1162_v50, %v1158_v42  ;;  %v794_v60 = vpop.f32.mrf.mxu3  ;;  %vm1171_vm1 = vweird.f32 %v2134_v7  ;;  %v1174_v29 = vand.u32 2147483647, %v3330_v26 }
 0x19b   : > { %v1498_v34 = vmul.f32 %v1466_v33, %v1163_v19  ;;  %1572 = vst [vmem:[%s2606_s11 + $0xc0] sm:$0xff] %v1540_v23  ;;  %v1167_v9 = vsub.f32 1.0, %v1166_v63  ;;  %v795_v35 = vadd.f32 %v794_v60, %v2824_v38  ;;  %v3389_v33 = vadd.f32 %v3089_v16, %v1378_v1  ;;  %vm1172_vm4 = vmor %vm1170_vm3, %vm1171_vm1 }
 0x19c   : > { %v599_v20 = vpop.f32.mrf.mxu0  ;;  %v3386_v45 = vpop.f32.mrf.mxu2  ;;  %vm1175_vm5 = vcmp.eq.f32.partialorder %v1174_v29, 8.507059e+37  ;;  %v1436_v51 = vmax.f32 %v684_v52, 0.0  ;;  %v1450_v1 = vmax.f32 %v3383_v57, 0.0  ;;  %v1191_v60 = vand.u32 2147483648, %v3359_v13 }
 0x19d   : > { %v1530_v5 = vadd.f32 %v1498_v34, %v768_v53  ;;  %v1168_v44 = vmul.f32 %v2134_v7, %v1167_v9  ;;  %v1477_v25 = vsub.f32 %v1445_v36, %v795_v35  ;;  %v600_v47 = vadd.f32 %v599_v20, %v2812_v15 }
 0x19e   : > { %v1384_v27 = vand.u32 2147483647, %v3037_v18  ;;  %vm1185_vm8 = vweird.f32 %v3359_v13  ;;  %v686_v46 = vadd.f32 %v3364_v12, %v2819_v32  ;;  %v3440_v12 = vadd.f32 %v3293_v22, %v2819_v32 }
 0x19f   : > { %v2136_v53 = vpop.eup %2135  ;;  %1562 = vst [vmem:[%s2606_s11 + $0x70] sm:$0xff] %v1530_v5  ;;  %v1169_v39 = vadd.f32 %v2134_v7, %v1168_v44  ;;  %v1509_v10 = vmul.f32 %v1477_v25, %v3138_v61  ;;  %v1840_v36 = vmul.f32 -1.442695, %v600_v47  ;;  %v773_v61 = vadd.f32 %v3349_v58, %v2824_v38 }
 0x1a0   : > { %v2138_v54 = vpop.eup %2137  ;;  %v3395_v49 = vadd.f32 1.0, %v2136_v53  ;;  %v688_v19 = vpop.f32.mrf.mxu1  ;;  %v1189_v58 = vand.u32 2147483647, %v3359_v13  ;;  %v1383_v5 = vsel %vm3409_vm6, %v3089_v16, %v3389_v33  ;;  %v1386_v44 = vand.u32 2147483648, %v3037_v18 }
 0x1a1   : > { %v1181_v11 = vmul.f32 %v2138_v54, %v3359_v13  ;;  %v1173_v31 = vsel %vm1172_vm4, %v2134_v7, %v1169_v39  ;;  %v1541_v21 = vadd.f32 %v1509_v10, %v795_v35  ;;  %2139 = vpow2.f32 %v1840_v36 }
 0x1a2   : > { %2141 = vrcp.f32 %v3395_v49  ;;  %v1178_v26 = vsel %vm1175_vm5, %v1177_v4, %v1173_v31  ;;  %v797_v50 = vpop.f32.mrf.mxu3  ;;  %vm1186_vm7 = vweird.f32 %v2138_v54  ;;  %v1468_v20 = vsub.f32 %v1436_v51, %v773_v61 }
 0x1a3   : > { %v1499_v63 = vmul.f32 %v1467_v8, %v1178_v26  ;;  %1573 = vst [vmem:[%s2606_s11 + $0xc8] sm:$0xff] %v1541_v21  ;;  %v1182_v42 = vsub.f32 1.0, %v1181_v11  ;;  %v798_v23 = vadd.f32 %v797_v50, %v2824_v38  ;;  %vm1187_vm9 = vmor %vm1185_vm8, %vm1186_vm7  ;;  %vm1190_vm10 = vcmp.eq.f32.partialorder %v1189_v58, 8.507059e+37 }
 0x1a4   : > { %v601_v34 = vpop.f32.mrf.mxu0  ;;  %v1192_v39 = vor.u32 1.1754944e-38, %v1191_v60  ;;  %vm3432_vm11 = vcmp.eq.f32.partialorder %v1384_v27, 8.507059e+37  ;;  %v1392_v10 = vsub.f32 1.0, %v3147_v6  ;;  %v1387_v31 = vor.u32 1.1754944e-38, %v1386_v44 }
 0x1a5   : > { %v1531_v9 = vadd.f32 %v1499_v63, %v770_v17  ;;  %v1183_v35 = vmul.f32 %v2138_v54, %v1182_v42  ;;  %v1478_v29 = vsub.f32 %v1446_v48, %v798_v23  ;;  %v602_v62 = vadd.f32 %v601_v34, %v2812_v15  ;;  %v777_v48 = vpop.f32.mrf.mxu2 }
 0x1a6   : > { %v1437_v26 = vmax.f32 %v686_v46, 0.0  ;;  %v1204_v22 = vand.u32 2147483647, %v3395_v49  ;;  %v1206_v50 = vand.u32 2147483648, %v3395_v49  ;;  %v1451_v27 = vmax.f32 %v3440_v12, 0.0 }
 0x1a7   : > { %v2140_v25 = vpop.eup %2139  ;;  %1563 = vst [vmem:[%s2606_s11 + $0x78] sm:$0xff] %v1531_v9  ;;  %v1184_v47 = vadd.f32 %v2138_v54, %v1183_v35  ;;  %v1510_v17 = vmul.f32 %v1478_v29, %v3235_v28  ;;  %v1841_v52 = vmul.f32 -1.442695, %v602_v62  ;;  %v689_v9 = vadd.f32 %v688_v19, %v2819_v32 }
 0x1a8   : > { %v2142_v53 = vpop.eup %2141  ;;  %v3429_v13 = vadd.f32 1.0, %v2140_v25  ;;  %v690_v34 = vpop.f32.mrf.mxu1  ;;  %vm1396_vm14 = vweird.f32 %v3125_v40  ;;  %vm1200_vm15 = vweird.f32 %v3395_v49  ;;  %vm1205_vm1 = vcmp.eq.f32.partialorder %v1204_v22, 8.507059e+37 }
 0x1a9   : > { %v1196_v28 = vmul.f32 %v2142_v53, %v3395_v49  ;;  %v1188_v36 = vsel %vm1187_vm9, %v2138_v54, %v1184_v47  ;;  %v1542_v4 = vadd.f32 %v1510_v17, %v798_v23  ;;  %2143 = vpow2.f32 %v1841_v52  ;;  %vm3485_vm3 = vmor %vm1395_vm12, %vm1396_vm14 }
 0x1aa   : > { %2145 = vrcp.f32 %v3429_v13  ;;  %v1193_v8 = vsel %vm1190_vm10, %v1192_v39, %v1188_v36  ;;  %v799_v11 = vpop.f32.mrf.mxu3  ;;  %v775_v54 = vadd.f32 %v3386_v45, %v2824_v38  ;;  %vm1201_vm13 = vweird.f32 %v2142_v53 }
 0x1ab   : > { %v1500_v21 = vmul.f32 %v1468_v20, %v1193_v8  ;;  %1574 = vst [vmem:[%s2606_s11 + $0xd0] sm:$0xff] %v1542_v4  ;;  %v1197_v6 = vsub.f32 1.0, %v1196_v28  ;;  %v800_v51 = vadd.f32 %v799_v11, %v2824_v38  ;;  %v1393_v45 = vmul.f32 %v3125_v40, %v1392_v10  ;;  %vm1202_vm0 = vmor %vm1200_vm15, %vm1201_vm13 }
 0x1ac   : > { %v604_v63 = vpop.f32.mrf.mxu0  ;;  %v1207_v19 = vor.u32 1.1754944e-38, %v1206_v50  ;;  %v1469_v20 = vsub.f32 %v1437_v26, %v775_v54  ;;  %v778_v52 = vadd.f32 %v777_v48, %v2824_v38  ;;  %v1219_v36 = vand.u32 2147483647, %v3429_v13 }
 0x1ad   : > { %v1532_v42 = vadd.f32 %v1500_v21, %v773_v61  ;;  %v1198_v23 = vmul.f32 %v2142_v53, %v1197_v6  ;;  %v1479_v58 = vsub.f32 %v1447_v41, %v800_v51  ;;  %v605_v60 = vadd.f32 %v604_v63, %v2812_v15  ;;  %v779_v17 = vpop.f32.mrf.mxu2 }
 0x1ae   : > { %v1221_v48 = vand.u32 2147483648, %v3429_v13  ;;  %v1394_v8 = vadd.f32 %v3125_v40, %v1393_v45  ;;  %vm1215_vm4 = vweird.f32 %v3429_v13  ;;  %v1401_v18 = vand.u32 2147483648, %v3064_v55 }
 0x1af   : > { %v2144_v35 = vpop.eup %2143  ;;  %1564 = vst [vmem:[%s2606_s11 + $0x80] sm:$0xff] %v1532_v42  ;;  %v1199_v29 = vadd.f32 %v2142_v53, %v1198_v23  ;;  %v1511_v61 = vmul.f32 %v1479_v58, %v3300_v3  ;;  %v1842_v56 = vmul.f32 -1.442695, %v605_v60  ;;  %v1438_v3 = vmax.f32 %v689_v9, 0.0 }
 0x1b0   : > { %v2146_v41 = vpop.eup %2145  ;;  %v3460_v62 = vadd.f32 1.0, %v2144_v35  ;;  %vm1220_vm6 = vcmp.eq.f32.partialorder %v1219_v36, 8.507059e+37  ;;  %vm1410_vm9 = vweird.f32 %v3103_v24  ;;  %vm1411_vm14 = vweird.f32 %v3165_v2 }
 0x1b1   : > { %v1211_v44 = vmul.f32 %v2146_v41, %v3429_v13  ;;  %v1203_v25 = vsel %vm1202_vm0, %v2142_v53, %v1199_v29  ;;  %v1543_v47 = vadd.f32 %v1511_v61, %v800_v51  ;;  %2147 = vpow2.f32 %v1842_v56  ;;  %vm3546_vm0 = vmor %vm1410_vm9, %vm1411_vm14 }
 0x1b2   : > { %2149 = vrcp.f32 %v3460_v62  ;;  %v1208_v49 = vsel %vm1205_vm1, %v1207_v19, %v1203_v25  ;;  %v802_v46 = vpop.f32.mrf.mxu3  ;;  %v1388_v53 = vsel %vm3432_vm11, %v1387_v31, %v1383_v5  ;;  %vm1216_vm2 = vweird.f32 %v2146_v41 }
 0x1b3   : > { %v1501_v39 = vmul.f32 %v1469_v20, %v1208_v49  ;;  %1575 = vst [vmem:[%s2606_s11 + $0xd8] sm:$0xff] %v1543_v47  ;;  %v1212_v10 = vsub.f32 1.0, %v1211_v44  ;;  %v803_v28 = vadd.f32 %v802_v46, %v2824_v38  ;;  %v1470_v33 = vsub.f32 %v1438_v3, %v778_v52  ;;  %vm1217_vm5 = vmor %vm1215_vm4, %vm1216_vm2 }
 0x1b4   : > { %v606_v4 = vpop.f32.mrf.mxu0  ;;  %v1399_v5 = vand.u32 2147483647, %v3064_v55  ;;  %v691_v51 = vadd.f32 %v690_v34, %v2819_v32  ;;  %v1222_v13 = vor.u32 1.1754944e-38, %v1221_v48  ;;  %v1398_v55 = vsel %vm3485_vm3, %v3125_v40, %v1394_v8 }
 0x1b5   : > { %v1533_v11 = vadd.f32 %v1501_v39, %v775_v54  ;;  %v1213_v21 = vmul.f32 %v2146_v41, %v1212_v10  ;;  %v1480_v7 = vsub.f32 %v1448_v43, %v803_v28  ;;  %v607_v26 = vadd.f32 %v606_v4, %v2812_v15  ;;  %v693_v54 = vpop.f32.mrf.mxu1  ;;  %v782_v29 = vpop.f32.mrf.mxu2 }
 0x1b6   : > { %vm3503_vm7 = vcmp.eq.f32.partialorder %v1399_v5, 8.507059e+37  ;;  %v1402_v34 = vor.u32 1.1754944e-38, %v1401_v18  ;;  %v1439_v45 = vmax.f32 %v691_v51, 0.0  ;;  %v780_v61 = vadd.f32 %v779_v17, %v2824_v38 }
 0x1b7   : > { %v2148_v31 = vpop.eup %2147  ;;  %1565 = vst [vmem:[%s2606_s11 + $0x88] sm:$0xff] %v1533_v11  ;;  %v1214_v59 = vadd.f32 %v2146_v41, %v1213_v21  ;;  %v1512_v43 = vmul.f32 %v1480_v7, %v3369_v14  ;;  %v1843_v6 = vmul.f32 -1.442695, %v607_v26  ;;  %v1234_v56 = vand.u32 2147483647, %v3460_v62 }
 0x1b8   : > { %v2150_v22 = vpop.eup %2149  ;;  %v3495_v50 = vadd.f32 1.0, %v2148_v31  ;;  %v694_v49 = vadd.f32 %v693_v54, %v2819_v32  ;;  %v1403_v3 = vsel %vm3503_vm7, %v1402_v34, %v1398_v55  ;;  %v1407_v17 = vsub.f32 1.0, %v3190_v0 }
 0x1b9   : > { %v1226_v63 = vmul.f32 %v2150_v22, %v3460_v62  ;;  %v1218_v42 = vsel %vm1217_vm5, %v2146_v41, %v1214_v59  ;;  %v1544_v14 = vadd.f32 %v1512_v43, %v803_v28  ;;  %2151 = vpow2.f32 %v1843_v6 }
 0x1ba   : > { %2153 = vrcp.f32 %v3495_v50  ;;  %v1223_v23 = vsel %vm1220_vm6, %v1222_v13, %v1218_v42  ;;  %v804_v58 = vpop.f32.mrf.mxu3  ;;  %vm1231_vm8 = vweird.f32 %v2150_v22  ;;  %v1236_v41 = vand.u32 2147483648, %v3460_v62 }
 0x1bb   : > { %v1502_v9 = vmul.f32 %v1470_v33, %v1223_v23  ;;  %1576 = vst [vmem:[%s2606_s11 + $0xe0] sm:$0xff] %v1544_v14  ;;  %v1227_v35 = vsub.f32 1.0, %v1226_v63  ;;  %v805_v40 = vadd.f32 %v804_v58, %v2824_v38  ;;  %vm1230_vm10 = vweird.f32 %v3460_v62 }
 0x1bc   : > { %v609_v19 = vpop.f32.mrf.mxu0  ;;  %vm1232_vm11 = vmor %vm1230_vm10, %vm1231_vm8  ;;  %vm1235_vm12 = vcmp.eq.f32.partialorder %v1234_v56, 8.507059e+37  ;;  %v1237_v28 = vor.u32 1.1754944e-38, %v1236_v41  ;;  %v1471_v36 = vsub.f32 %v1439_v45, %v780_v61  ;;  %v1408_v21 = vmul.f32 %v3165_v2, %v1407_v17 }
 0x1bd   : > { %v1534_v20 = vadd.f32 %v1502_v9, %v778_v52  ;;  %v1228_v44 = vmul.f32 %v2150_v22, %v1227_v35  ;;  %v1481_v25 = vsub.f32 %v1449_v30, %v805_v40  ;;  %v610_v47 = vadd.f32 %v609_v19, %v2812_v15  ;;  %v695_v8 = vpop.f32.mrf.mxu1  ;;  %v784_v54 = vpop.f32.mrf.mxu2 }
 0x1be   : > { %v783_v26 = vadd.f32 %v782_v29, %v2824_v38  ;;  %v1249_v5 = vand.u32 2147483647, %v3495_v50  ;;  %v1251_v18 = vand.u32 2147483648, %v3495_v50  ;;  %vm1245_vm15 = vweird.f32 %v3495_v50 }
 0x1bf   : > { %v2152_v46 = vpop.eup %2151  ;;  %1566 = vst [vmem:[%s2606_s11 + $0x90] sm:$0xff] %v1534_v20  ;;  %v1229_v39 = vadd.f32 %v2150_v22, %v1228_v44  ;;  %v1513_v52 = vmul.f32 %v1481_v25, %v1388_v53  ;;  %v1844_v10 = vmul.f32 -1.442695, %v610_v47  ;;  %v1440_v53 = vmax.f32 %v694_v49, 0.0 }
 0x1c0   : > { %v2154_v37 = vpop.eup %2153  ;;  %v3522_v30 = vadd.f32 1.0, %v2152_v46  ;;  %v1414_v13 = vand.u32 2147483647, %v3103_v24  ;;  %v1416_v55 = vand.u32 2147483648, %v3103_v24  ;;  %vm1250_vm2 = vcmp.eq.f32.partialorder %v1249_v5, 8.507059e+37 }
 0x1c1   : > { %v1241_v0 = vmul.f32 %v2154_v37, %v3495_v50  ;;  %v1233_v48 = vsel %vm1232_vm11, %v2150_v22, %v1229_v39  ;;  %v1545_v4 = vadd.f32 %v1513_v52, %v805_v40  ;;  %2155 = vpow2.f32 %v1844_v10 }
 0x1c2   : > { %2157 = vrcp.f32 %v3522_v30  ;;  %v1238_v62 = vsel %vm1235_vm12, %v1237_v28, %v1233_v48  ;;  %v807_v11 = vpop.f32.mrf.mxu3  ;;  %vm1246_vm13 = vweird.f32 %v2154_v37  ;;  %v1409_v22 = vadd.f32 %v3165_v2, %v1408_v21 }
 0x1c3   : > { %v1503_v7 = vmul.f32 %v1471_v36, %v1238_v62  ;;  %1577 = vst [vmem:[%s2606_s11 + $0xe8] sm:$0xff] %v1545_v4  ;;  %v1242_v16 = vsub.f32 1.0, %v1241_v0  ;;  %v808_v33 = vadd.f32 %v807_v11, %v2824_v38  ;;  %v1472_v14 = vsub.f32 %v1440_v53, %v783_v26  ;;  %vm1247_vm1 = vmor %vm1245_vm15, %vm1246_vm13 }
 0x1c4   : > { %v611_v31 = vpop.f32.mrf.mxu0  ;;  %v1252_v50 = vor.u32 1.1754944e-38, %v1251_v18  ;;  %v696_v60 = vadd.f32 %v695_v8, %v2819_v32  ;;  %v1413_v40 = vsel %vm3546_vm0, %v3165_v2, %v1409_v22  ;;  %v1417_v29 = vor.u32 1.1754944e-38, %v1416_v55 }
 0x1c5   : > { %v1535_v59 = vadd.f32 %v1503_v7, %v780_v61  ;;  %v1243_v43 = vmul.f32 %v2154_v37, %v1242_v16  ;;  %v1482_v6 = vsub.f32 %v1450_v1, %v808_v33  ;;  %v612_v51 = vadd.f32 %v611_v31, %v2812_v15  ;;  %v698_v19 = vpop.f32.mrf.mxu1 }
 0x1c6   : > { %vm1415_vm3 = vcmp.eq.f32.partialorder %v1414_v13, 8.507059e+37  ;;  %v1441_v20 = vmax.f32 %v696_v60, 0.0  ;;  %v785_v44 = vadd.f32 %v784_v54, %v2824_v38  ;;  %v1264_v25 = vand.u32 2147483647, %v3522_v30 }
 0x1c7   : > { %v2156_v63 = vpop.eup %2155  ;;  %1567 = vst [vmem:[%s2606_s11 + $0x98] sm:$0xff] %v1535_v59  ;;  %v1244_v42 = vadd.f32 %v2154_v37, %v1243_v43  ;;  %v1514_v23 = vmul.f32 %v1482_v6, %v1403_v3  ;;  %v1845_v58 = vmul.f32 -1.442695, %v612_v51  ;;  %v1266_v47 = vand.u32 2147483648, %v3522_v30 }
 0x1c8   : > { %v2158_v57 = vpop.eup %2157  ;;  %v3550_v1 = vadd.f32 1.0, %v2156_v63  ;;  %v1418_v17 = vsel %vm1415_vm3, %v1417_v29, %v1413_v40  ;;  %vm1260_vm5 = vweird.f32 %v3522_v30  ;;  %v699_v10 = vadd.f32 %v698_v19, %v2819_v32 }
 0x1c9   : > { %v1256_v34 = vmul.f32 %v2158_v57, %v3522_v30  ;;  %v1248_v9 = vsel %vm1247_vm1, %v2154_v37, %v1244_v42  ;;  %v1546_v45 = vadd.f32 %v1514_v23, %v808_v33  ;;  %2159 = vpow2.f32 %v1845_v58  ;;  %v787_v37 = vpop.f32.mrf.mxu2 }
 0x1ca   : > { %2161 = vrcp.f32 %v3550_v1  ;;  %v1253_v24 = vsel %vm1250_vm2, %v1252_v50, %v1248_v9  ;;  %v809_v35 = vpop.f32.mrf.mxu3  ;;  %vm1261_vm4 = vweird.f32 %v2158_v57  ;;  %v1267_v0 = vor.u32 1.1754944e-38, %v1266_v47 }
 0x1cb   : > { %v1504_v61 = vmul.f32 %v1472_v14, %v1253_v24  ;;  %1578 = vst [vmem:[%s2606_s11 + $0xf0] sm:$0xff] %v1546_v45  ;;  %v1257_v56 = vsub.f32 1.0, %v1256_v34  ;;  %v810_v41 = vadd.f32 %v809_v35, %v2824_v38  ;;  %vm1262_vm6 = vmor %vm1260_vm5, %vm1261_vm4  ;;  %v1473_v48 = vsub.f32 %v1441_v20, %v785_v44 }
 0x1cc   : > { %vm1265_vm7 = vcmp.eq.f32.partialorder %v1264_v25, 8.507059e+37  ;;  %v1442_v30 = vmax.f32 %v699_v10, 0.0  ;;  %v788_v53 = vadd.f32 %v787_v37, %v2824_v38  ;;  %v1281_v21 = vand.u32 2147483648, %v3550_v1 }
 0x1cd   : > { %v1536_v49 = vadd.f32 %v1504_v61, %v783_v26  ;;  %v1258_v3 = vmul.f32 %v2158_v57, %v1257_v56  ;;  %v1483_v2 = vsub.f32 %v1451_v27, %v810_v41  ;;  %v1279_v16 = vand.u32 2147483647, %v3550_v1  ;;  %v700_v33 = vpop.f32.mrf.mxu1 }
 0x1ce   : > { %vm1275_vm9 = vweird.f32 %v3550_v1  ;;  %v1474_v18 = vsub.f32 %v1442_v30, %v788_v53  ;;  %v1282_v59 = vor.u32 1.1754944e-38, %v1281_v21  ;;  %v701_v43 = vadd.f32 %v700_v33, %v2819_v32 }
 0x1cf   : > { %v2160_v46 = vpop.eup %2159  ;;  %1568 = vst [vmem:[%s2606_s11 + $0xa0] sm:$0xff] %v1536_v49  ;;  %v1259_v39 = vadd.f32 %v2158_v57, %v1258_v3  ;;  %v1515_v52 = vmul.f32 %v1483_v2, %v1418_v17  ;;  %vm1280_vm11 = vcmp.eq.f32.partialorder %v1279_v16, 8.507059e+37 }
 0x1d0   : > { %v2162_v28 = vpop.eup %2161  ;;  %v931_v36 = vadd.f32 1.0, %v2160_v46  ;;  %v1443_v63 = vmax.f32 %v701_v43, 0.0 }
 0x1d1   : > { %v1271_v4 = vmul.f32 %v2162_v28, %v3550_v1  ;;  %v1263_v12 = vsel %vm1262_vm6, %v2158_v57, %v1259_v39  ;;  %v1547_v27 = vadd.f32 %v1515_v52, %v810_v41  ;;  %vm1276_vm8 = vweird.f32 %v2162_v28  ;;  %v789_v54 = vpop.f32.mrf.mxu2 }
 0x1d2   : > { %2163 = vrcp.f32 %v931_v36  ;;  %v1268_v8 = vsel %vm1265_vm7, %v1267_v0, %v1263_v12  ;;  %vm1277_vm10 = vmor %vm1275_vm9, %vm1276_vm8  ;;  %v790_v42 = vadd.f32 %v789_v54, %v2824_v38  ;;  %v1296_v14 = vand.u32 2147483648, %v931_v36 }
 0x1d3   : > { %v1505_v62 = vmul.f32 %v1473_v48, %v1268_v8  ;;  %1579 = vst [vmem:[%s2606_s11 + $0xf8] sm:$0xff] %v1547_v27  ;;  %v1272_v11 = vsub.f32 1.0, %v1271_v4  ;;  %v1294_v15 = vand.u32 2147483647, %v931_v36  ;;  %vm1290_vm13 = vweird.f32 %v931_v36 }
 0x1d4   : > { %v1297_v57 = vor.u32 1.1754944e-38, %v1296_v14  ;;  %v1475_v38 = vsub.f32 %v1443_v63, %v790_v42 }
 0x1d5   : > { %v1537_v7 = vadd.f32 %v1505_v62, %v785_v44  ;;  %v1273_v26 = vmul.f32 %v2162_v28, %v1272_v11  ;;  %vm1295_vm15 = vcmp.eq.f32.partialorder %v1294_v15, 8.507059e+37 }
 0x1d7   : > { %1569 = vst [vmem:[%s2606_s11 + $0xa8] sm:$0xff] %v1537_v7  ;;  %v1274_v5 = vadd.f32 %v2162_v28, %v1273_v26 }
 0x1d8   : > { %v2164_v31 = vpop.eup %2163 }
 0x1d9   : > { %v1286_v6 = vmul.f32 %v2164_v31, %v931_v36  ;;  %v1278_v51 = vsel %vm1277_vm10, %v2162_v28, %v1274_v5  ;;  %vm1291_vm12 = vweird.f32 %v2164_v31 }
 0x1da   : > { %v1283_v22 = vsel %vm1280_vm11, %v1282_v59, %v1278_v51  ;;  %vm1292_vm14 = vmor %vm1290_vm13, %vm1291_vm12 }
 0x1db   : > { %v1506_v13 = vmul.f32 %v1474_v18, %v1283_v22  ;;  %v1287_v55 = vsub.f32 1.0, %v1286_v6 }
 0x1dd   : > { %v1538_v23 = vadd.f32 %v1506_v13, %v788_v53  ;;  %v1288_v58 = vmul.f32 %v2164_v31, %v1287_v55 }
 0x1df   : > { %1570 = vst [vmem:[%s2606_s11 + $0xb0] sm:$0xff] %v1538_v23  ;;  %v1289_v32 = vadd.f32 %v2164_v31, %v1288_v58 }
 0x1e1   : > { %v1293_v1 = vsel %vm1292_vm14, %v2164_v31, %v1289_v32 }
 0x1e2   : > { %v1298_v50 = vsel %vm1295_vm15, %v1297_v57, %v1293_v1 }
 0x1e3   : > { %v1507_v60 = vmul.f32 %v1475_v38, %v1298_v50 }
 0x1e5   : > { %v1539_v34 = vadd.f32 %v1507_v60, %v790_v42 }
 0x1e7   : > { %1571 = vst [vmem:[%s2606_s11 + $0xb8] sm:$0xff] %v1539_v34 }
 0x1e8   : > { %2282 = shalt.err (!%p2279_p11)
}
 0x1e9   : > { %s2392_s25 = smov 128   ;;  %s2393_s11 = smov 8  }
 0x1ea   : > { %1921 = dma.vmem_to_hbm [thread:$0]  (%p2526_p13), %s1594_s7, 4096, %s1596_s10, %s1581_s23, %s2392_s25, %s2392_s25, %s2393_s11  }
 0x1eb PF: > { %s3688_s5 = sld [smem:[#allocation13_spill]]  ;;  %p1941_p0 = scmp.ge.s32.totalorder %s2385_s22, 2 }
 0x1ed   : > { %p1935_p2 = pnand %p1941_p0, %p2490_p6 }
 0x1ef   : > { %p1936_p4 = pneg %p1935_p2 }
 0x1f1   : > { %s1610_s18 = sand.u32 1, %s3688_s5  }
 0x1f2   : > { %s1611_s28 = scalar_lea.sflag [#allocation4], %s1610_s18 }
 0x1f3   : > { %2340 = dma.done.wait (%p1936_p4), %s1611_s28, 4096  }
 0x1f4   : > { %2342 = vsyncadd (%p1936_p4), %s1611_s28, 4294963200  ;;  %s20_s22 = sadd.s32 1, %s2385_s22   ;;  %s3690_s30 = smov %s2566_s12 }
 0x1f5   : > { %p17_p1 = scmp.ge.s32.totalorder %s20_s22, 8   ;;  %s3691_s29 = sld [smem:[#allocation16_spill]] }
 0x1f6   : > { %s3692_s12 = smov %s2349_s13  ;;  %s3693_s13 = smov %s2353_s14 }
 0x1f7   : > { %s3694_s14 = smov %s3690_s30  ;;  %s3695_s15 = smov %s2361_s16 }
 0x1f8   : > { %s3696_s16 = smov %s2365_s17  ;;  %s3697_s17 = smov %s2576_s6 }
 0x1f9   : > { %s3698_s18 = smov %s2377_s20  ;;  %s3699_s19 = smov %s2381_s21 }
 0x1fa   : > { %s3701_s21 = smov %s3707_s24  ;;  %19 = sbr.rel (!%p17_p1) target bundleno = 13 (0xd), region = 97 }
 0x1fb   : > { %s3700_s20 = smov %s3691_s29 }
 0x1ff   :  { %1617 = vsyncpa [#allocation3], 1 }
 0x200   :  { %1619 = vsyncpa [#allocation3 + $0x1], 1 }
 0x201   :  { %1620 = vsyncpa [#allocation6], 1 }
 0x202   :  { %1621 = vsyncpa [#allocation4], 1 }
 0x203   :  { %1623 = vsyncpa [#allocation4 + $0x1], 1 }

</bundles_post_ra>
